<compile_context>
chip_gen: v7x
topology: tpu7x:2x2x1
jax: 0.10.0
libtpu: 0.0.40
codegen_flags: <defaults>
</compile_context>

<pallas_src>
import jax
import jax.numpy as jnp
from jax.experimental import pallas as pl
from jax.experimental.pallas import tpu as pltpu

NEG_SLOPE = 0.01   # nn.LeakyReLU default
BN_EPS = 1e-5      # nn.BatchNorm1d default
LANE = 128         # TPU lane width (lane-dense output slab)


def _leaky(v):
    return jnp.where(v > 0, v, NEG_SLOPE * v)


# --------------------------------------------------------------------------------------
# Kernel 1: GraphConv1 (mean aggregation) + LeakyReLU + BatchNorm1, tiled over (i, k).
#   grid = (node tiles i, reduction tiles k over A's columns)
#   acc_i += A[i, k] @ (x[k] @ Wrel1)          (re-associated: narrow r1-wide output)
#   at k == last:  h[i] = bn1(leaky(acc_i + x[i] @ Wroot1 + brel1))
# --------------------------------------------------------------------------------------
def graphconv1_kernel(a_ref, xk_ref, xi_ref, wrel_ref, wroot_ref,
                      brel_ref, bns_ref, bnb_ref, h_ref, acc_ref):
    k = pl.program_id(1)

    @pl.when(k == 0)
    def _():
        acc_ref[...] = jnp.zeros_like(acc_ref)

    # (x_k @ Wrel1) first (contraction r0), then A_ik @ t (contraction tk, width r1).
    t = jnp.dot(xk_ref[...], wrel_ref[...], preferred_element_type=jnp.float32)
    acc_ref[...] += jnp.dot(a_ref[...], t.astype(jnp.bfloat16),
                            preferred_element_type=jnp.float32)

    @pl.when(k == pl.num_programs(1) - 1)
    def _():
        root = jnp.dot(xi_ref[...], wroot_ref[...],
                       preferred_element_type=jnp.float32)
        v = acc_ref[...] + root + brel_ref[...]
        v = _leaky(v)
        v = v * bns_ref[...] + bnb_ref[...]        # bn1 affine (exact, f32)
        h_ref[...] = v.astype(h_ref.dtype)


# --------------------------------------------------------------------------------------
# Kernel 2: GraphConv2 + LeakyReLU + (bn2 folded) MLP head, tiled over (i, k).
#   acc_i += A[i, k] @ (h[k] @ Wrel2)
#   at k == last:  u  = leaky(acc_i + h[i] @ Wroot2 + brel2)
#                  z  = leaky(u @ W3f + b3f)       (bn2 + bn3 folded into W3f/b3f)
#                  z  = leaky(z @ W4f + b4f)       (bn4 folded into W4f/b4f)
#                  out[i] = z @ W5pad + b5pad      (lane-dense [tm, 128] slab)
# --------------------------------------------------------------------------------------
def graphconv2_head_kernel(a_ref, hk_ref, hi_ref, wrel_ref, wroot_ref, brel_ref,
                           w3_ref, b3_ref, w4_ref, b4_ref, w5_ref, b5_ref,
                           o_ref, acc_ref):
    k = pl.program_id(1)

    @pl.when(k == 0)
    def _():
        acc_ref[...] = jnp.zeros_like(acc_ref)

    t = jnp.dot(hk_ref[...], wrel_ref[...], preferred_element_type=jnp.float32)
    acc_ref[...] += jnp.dot(a_ref[...], t.astype(jnp.bfloat16),
                            preferred_element_type=jnp.float32)

    @pl.when(k == pl.num_programs(1) - 1)
    def _():
        root = jnp.dot(hi_ref[...], wroot_ref[...],
                       preferred_element_type=jnp.float32)
        u = _leaky(acc_ref[...] + root + brel_ref[...])

        z = jnp.dot(u.astype(jnp.bfloat16), w3_ref[...],
                    preferred_element_type=jnp.float32) + b3_ref[...]
        z = _leaky(z)
        z = jnp.dot(z.astype(jnp.bfloat16), w4_ref[...],
                    preferred_element_type=jnp.float32) + b4_ref[...]
        z = _leaky(z)
        o_ref[...] = (jnp.dot(z.astype(jnp.bfloat16), w5_ref[...],
                              preferred_element_type=jnp.float32) + b5_ref[...])


# --------------------------------------------------------------------------------------
# Wrapper
# --------------------------------------------------------------------------------------
def gcn_forward(a_norm, x, kp, *, tile=256):
    """a_norm: [N, N] f32 row-normalized adjacency.  x: [N, r0] f32.  kp: folded params."""
    n, r0 = x.shape
    n_pad = ((n + tile - 1) // tile) * tile

    a_p = jnp.zeros((n_pad, n_pad), jnp.bfloat16).at[:n, :n].set(
        a_norm.astype(jnp.bfloat16))
    x_p = jnp.zeros((n_pad, r0), jnp.bfloat16).at[:n, :].set(x.astype(jnp.bfloat16))

    grid = (n_pad // tile, n_pad // tile)
    cp = pltpu.CompilerParams(
        dimension_semantics=("parallel", "arbitrary"),   # node tiles parallel, A-reduction last
        vmem_limit_bytes=32 * 1024 * 1024)

    r1 = kp["wrel1"].shape[1]
    h = pl.pallas_call(
        graphconv1_kernel,
        out_shape=jax.ShapeDtypeStruct((n_pad, r1), jnp.bfloat16),
        grid_spec=pltpu.PrefetchScalarGridSpec(
            num_scalar_prefetch=0,
            grid=grid,
            in_specs=[
                pl.BlockSpec((tile, tile), lambda i, k: (i, k)),   # A tile
                pl.BlockSpec((tile, r0), lambda i, k: (k, 0)),     # x (rel path, reduction tile)
                pl.BlockSpec((tile, r0), lambda i, k: (i, 0)),     # x (root path, output tile)
                pl.BlockSpec((r0, r1), lambda i, k: (0, 0)),       # Wrel1
                pl.BlockSpec((r0, r1), lambda i, k: (0, 0)),       # Wroot1
                pl.BlockSpec((1, r1), lambda i, k: (0, 0)),        # brel1
                pl.BlockSpec((1, r1), lambda i, k: (0, 0)),        # bn1 scale
                pl.BlockSpec((1, r1), lambda i, k: (0, 0)),        # bn1 shift
            ],
            out_specs=pl.BlockSpec((tile, r1), lambda i, k: (i, 0)),
            scratch_shapes=[pltpu.VMEM((tile, r1), jnp.float32)],
        ),
        compiler_params=cp,
    )(a_p, x_p, x_p, kp["wrel1"], kp["wroot1"], kp["brel1"], kp["bn1s"], kp["bn1b"])

    r2 = kp["wrel2"].shape[1]
    n1 = kp["w3"].shape[1]
    n2 = kp["w4"].shape[1]
    out_pad = pl.pallas_call(
        graphconv2_head_kernel,
        out_shape=jax.ShapeDtypeStruct((n_pad, LANE), jnp.float32),
        grid_spec=pltpu.PrefetchScalarGridSpec(
            num_scalar_prefetch=0,
            grid=grid,
            in_specs=[
                pl.BlockSpec((tile, tile), lambda i, k: (i, k)),   # A tile
                pl.BlockSpec((tile, r1), lambda i, k: (k, 0)),     # h (rel path)
                pl.BlockSpec((tile, r1), lambda i, k: (i, 0)),     # h (root path)
                pl.BlockSpec((r1, r2), lambda i, k: (0, 0)),       # Wrel2
                pl.BlockSpec((r1, r2), lambda i, k: (0, 0)),       # Wroot2
                pl.BlockSpec((1, r2), lambda i, k: (0, 0)),        # brel2
                pl.BlockSpec((r2, n1), lambda i, k: (0, 0)),       # W3 (bn2+bn3 folded)
                pl.BlockSpec((1, n1), lambda i, k: (0, 0)),        # b3 folded
                pl.BlockSpec((n1, n2), lambda i, k: (0, 0)),       # W4 (bn4 folded)
                pl.BlockSpec((1, n2), lambda i, k: (0, 0)),        # b4 folded
                pl.BlockSpec((n2, LANE), lambda i, k: (0, 0)),     # W5 padded to 128 lanes
                pl.BlockSpec((1, LANE), lambda i, k: (0, 0)),      # b5 padded
            ],
            out_specs=pl.BlockSpec((tile, LANE), lambda i, k: (i, 0)),
            scratch_shapes=[pltpu.VMEM((tile, r2), jnp.float32)],
        ),
        compiler_params=cp,
    )(a_p, h, h, kp["wrel2"], kp["wroot2"], kp["brel2"],
      kp["w3"], kp["b3"], kp["w4"], kp["b4"], kp["w5"], kp["b5"])

    return out_pad[:n, :1]


# --------------------------------------------------------------------------------------
# Parameter construction (glue): raw torch-style params, BN folding, bf16 casting.
# --------------------------------------------------------------------------------------
def _linear_init(key, fan_in, fan_out):
    kw, kb = jax.random.split(key)
    bound = 1.0 / jnp.sqrt(jnp.float32(fan_in))
    w = jax.random.uniform(kw, (fan_out, fan_in), jnp.float32, -bound, bound)
    b = jax.random.uniform(kb, (fan_out,), jnp.float32, -bound, bound)
    return w, b


def _bn_init(key, c):
    kg, kb, km, kv = jax.random.split(key, 4)
    gamma = jax.random.uniform(kg, (c,), jnp.float32, 0.5, 1.5)
    beta = 0.2 * jax.random.normal(kb, (c,), jnp.float32)
    mean = 0.2 * jax.random.normal(km, (c,), jnp.float32)
    var = jax.random.uniform(kv, (c,), jnp.float32, 0.5, 1.5)
    return (gamma, beta, mean, var)


def make_raw_params(key, r0, gcn_sizes=(16, 8), nn_sizes=(128, 8)):
    r1, r2 = gcn_sizes
    n1, n2 = nn_sizes
    ks = jax.random.split(key, 11)
    wrel1, brel1 = _linear_init(ks[0], r0, r1)
    wroot1, _ = _linear_init(ks[1], r0, r1)
    wrel2, brel2 = _linear_init(ks[2], r1, r2)
    wroot2, _ = _linear_init(ks[3], r1, r2)
    w3, b3 = _linear_init(ks[4], r2, n1)
    w4, b4 = _linear_init(ks[5], n1, n2)
    w5, b5 = _linear_init(ks[6], n2, 1)
    return dict(
        wrel1=wrel1, brel1=brel1, wroot1=wroot1,
        wrel2=wrel2, brel2=brel2, wroot2=wroot2,
        w3=w3, b3=b3, w4=w4, b4=b4, w5=w5, b5=b5,
        bn1=_bn_init(ks[7], r1), bn2=_bn_init(ks[8], r2),
        bn3=_bn_init(ks[9], n1), bn4=_bn_init(ks[10], n2),
    )


def fold_params(raw):
    """Fold eval-mode BatchNorms into adjacent Linears, pre-transpose, cast to bf16."""
    f32, bf = jnp.float32, jnp.bfloat16

    def bn_affine(gamma, beta, mean, var):
        s = gamma / jnp.sqrt(var + BN_EPS)
        return s, beta - mean * s

    s1, c1 = bn_affine(*raw["bn1"])
    s2, c2 = bn_affine(*raw["bn2"])
    s3, c3 = bn_affine(*raw["bn3"])
    s4, c4 = bn_affine(*raw["bn4"])

    w3_t = raw["w3"].T      # [r2, n1]
    w4_t = raw["w4"].T      # [n1, n2]
    w5_t = raw["w5"].T      # [n2, 1]

    # bn2 (input side) + bn3 (output side) -> W3/b3      (exact, eval mode)
    w3_f = (s2[:, None] * w3_t) * s3[None, :]
    b3_f = c2 @ (w3_t * s3[None, :]) + raw["b3"] * s3 + c3
    # bn4 (output side) -> W4/b4
    w4_f = w4_t * s4[None, :]
    b4_f = raw["b4"] * s4 + c4
    # Final Linear padded to a 128-lane slab (lane-dense store; col 0 is the real output).
    n2 = w5_t.shape[0]
    w5_p = jnp.zeros((n2, LANE), f32).at[:, :1].set(w5_t)
    b5_p = jnp.zeros((1, LANE), f32).at[0, 0].set(raw["b5"][0])

    return dict(
        wrel1=raw["wrel1"].T.astype(bf), wroot1=raw["wroot1"].T.astype(bf),
        brel1=raw["brel1"].reshape(1, -1).astype(f32),
        bn1s=s1.reshape(1, -1).astype(f32), bn1b=c1.reshape(1, -1).astype(f32),
        wrel2=raw["wrel2"].T.astype(bf), wroot2=raw["wroot2"].T.astype(bf),
        brel2=raw["brel2"].reshape(1, -1).astype(f32),
        w3=w3_f.astype(bf), b3=b3_f.reshape(1, -1).astype(f32),
        w4=w4_f.astype(bf), b4=b4_f.reshape(1, -1).astype(f32),
        w5=w5_p.astype(bf), b5=b5_p,
    )


def edge_index_to_mean_adj(edge_index, num_nodes):
    """Dense row-normalized adjacency: A[i, j] = (#edges j->i) / in_degree(i) (mean aggr)."""
    src, dst = edge_index[0], edge_index[1]
    a = jnp.zeros((num_nodes, num_nodes), jnp.float32).at[dst, src].add(1.0)
    deg = jnp.sum(a, axis=1, keepdims=True)
    return a / jnp.maximum(deg, 1.0)


# --------------------------------------------------------------------------------------
# Pure-JAX f32 reference (mirrors the PyTorch module in eval mode).
# --------------------------------------------------------------------------------------
def gcn_reference(a, x, p):
    def bn(v, prm):
        g, b, m, var = prm
        return (v - m) / jnp.sqrt(var + BN_EPS) * g + b
    h = (a @ x) @ p["wrel1"].T + p["brel1"] + x @ p["wroot1"].T
    h = bn(_leaky(h), p["bn1"])
    h2 = (a @ h) @ p["wrel2"].T + p["brel2"] + h @ p["wroot2"].T
    h2 = bn(_leaky(h2), p["bn2"])
    z = _leaky(bn(h2 @ p["w3"].T + p["b3"], p["bn3"]))
    z = _leaky(bn(z @ p["w4"].T + p["b4"], p["bn4"]))
    return z @ p["w5"].T + p["b5"]


if __name__ == "__main__":
    key = jax.random.PRNGKey(0)
    k_feat, k_edge, k_param = jax.random.split(key, 3)

    N = 512          # nodes (multiple of the 256 tile -> grid (2, 2), exercises tiling)
    R0 = 32          # raw_feature_size
    E = 2048         # edges

    x = jax.random.normal(k_feat, (N, R0), jnp.float32)
    edge_index = jax.random.randint(k_edge, (2, E), 0, N, jnp.int32)

    a_norm = edge_index_to_mean_adj(edge_index, N)   # glue: sparse -> dense mean aggr
    raw = make_raw_params(k_param, R0)
    kp = fold_params(raw)

    out = gcn_forward(a_norm, x, kp)
    jax.block_until_ready(out)
    assert out.shape == (N, 1)

    ref = gcn_reference(a_norm, x, raw)
    err = float(jnp.max(jnp.abs(out - ref)))
    scale = float(jnp.max(jnp.abs(ref))) + 1e-3
    assert err <= 0.1 * scale + 0.02, f"mismatch: max|diff|={err}, scale={scale}"
    print("KERNEL_OK")
</pallas_src>

<mosaic_0001>
module attributes {stable_mosaic.version = 11 : i64} {
  func.func @graphconv1_kernel(%arg0: i32, %arg1: i32, %arg2: memref<256x256xbf16, #tpu.memory_space<vmem>>, %arg3: memref<256x32xbf16, #tpu.memory_space<vmem>>, %arg4: memref<256x32xbf16, #tpu.memory_space<vmem>>, %arg5: memref<32x16xbf16, #tpu.memory_space<vmem>>, %arg6: memref<32x16xbf16, #tpu.memory_space<vmem>>, %arg7: memref<1x16xf32, #tpu.memory_space<vmem>>, %arg8: memref<1x16xf32, #tpu.memory_space<vmem>>, %arg9: memref<1x16xf32, #tpu.memory_space<vmem>>, %arg10: memref<256x16xbf16, #tpu.memory_space<vmem>>, %arg11: memref<256x16xf32, #tpu.memory_space<vmem>>) attributes {dimension_semantics = [#tpu.dimension_semantics<parallel>, #tpu.dimension_semantics<arbitrary>], iteration_bounds = array<i64: 2, 2>, scalar_prefetch = 0 : i64, scratch_operands = 1 : i64, tpu.core_type = #tpu.core_type<tc>, window_params = [{transform_indices = @transform_0, window_bounds = array<i64: 256, 256>}, {transform_indices = @transform_1, window_bounds = array<i64: 256, 32>}, {transform_indices = @transform_2, window_bounds = array<i64: 256, 32>}, {pipeline_mode = #tpu.pipeline_mode<synchronous>, transform_indices = @transform_3, window_bounds = array<i64: 32, 16>}, {pipeline_mode = #tpu.pipeline_mode<synchronous>, transform_indices = @transform_4, window_bounds = array<i64: 32, 16>}, {pipeline_mode = #tpu.pipeline_mode<synchronous>, transform_indices = @transform_5, window_bounds = array<i64: 1, 16>}, {pipeline_mode = #tpu.pipeline_mode<synchronous>, transform_indices = @transform_6, window_bounds = array<i64: 1, 16>}, {pipeline_mode = #tpu.pipeline_mode<synchronous>, transform_indices = @transform_7, window_bounds = array<i64: 1, 16>}, {transform_indices = @transform_8, window_bounds = array<i64: 256, 16>}]} {
    %c0_i32 = arith.constant 0 : i32
    %0 = arith.cmpi eq, %arg1, %c0_i32 : i32
    %1 = arith.extui %0 : i1 to i32
    %c0_i32_0 = arith.constant 0 : i32
    %2 = arith.cmpi ne, %1, %c0_i32_0 : i32
    scf.if %2 {
      %cst_12 = arith.constant 0.000000e+00 : f32
      %15 = vector.broadcast %cst_12 : f32 to vector<256x16xf32>
      %c0_13 = arith.constant 0 : index
      %c0_14 = arith.constant 0 : index
      %16 = vector.load %arg11[%c0_13, %c0_14] : memref<256x16xf32, #tpu.memory_space<vmem>>, vector<256x16xf32>
      tpu.vector_store %arg11[%c0_13, %c0_14], %15 {strides = array<i32>} : memref<256x16xf32, #tpu.memory_space<vmem>>, vector<256x16xf32>,
    } else {
    }
    %c0 = arith.constant 0 : index
    %c0_1 = arith.constant 0 : index
    %3 = vector.load %arg3[%c0, %c0_1] : memref<256x32xbf16, #tpu.memory_space<vmem>>, vector<256x32xbf16>
    %c0_2 = arith.constant 0 : index
    %c0_3 = arith.constant 0 : index
    %4 = vector.load %arg5[%c0_2, %c0_3] : memref<32x16xbf16, #tpu.memory_space<vmem>>, vector<32x16xbf16>
    %cst = arith.constant dense<0.000000e+00> : vector<256x16xf32>
    %5 = tpu.matmul %3, %4, %cst {dimension_numbers = #tpu.dot_dimension_numbers<[1], [0], [0], [1], [0, 0, 1, 1], [], []>} : vector<256x32xbf16>, vector<32x16xbf16>, vector<256x16xf32> -> vector<256x16xf32>
    %c0_4 = arith.constant 0 : index
    %c0_5 = arith.constant 0 : index
    %6 = vector.load %arg11[%c0_4, %c0_5] : memref<256x16xf32, #tpu.memory_space<vmem>>, vector<256x16xf32>
    %c0_6 = arith.constant 0 : index
    %c0_7 = arith.constant 0 : index
    %7 = vector.load %arg2[%c0_6, %c0_7] : memref<256x256xbf16, #tpu.memory_space<vmem>>, vector<256x256xbf16>
    %8 = arith.truncf %5 : vector<256x16xf32> to vector<256x16xbf16>
    %cst_8 = arith.constant dense<0.000000e+00> : vector<256x16xf32>
    %9 = tpu.matmul %7, %8, %cst_8 {dimension_numbers = #tpu.dot_dimension_numbers<[1], [0], [0], [1], [0, 0, 1, 1], [], []>} : vector<256x256xbf16>, vector<256x16xbf16>, vector<256x16xf32> -> vector<256x16xf32>
    %10 = arith.addf %6, %9 : vector<256x16xf32>
    %c0_9 = arith.constant 0 : index
    %c0_10 = arith.constant 0 : index
    %11 = vector.load %arg11[%c0_9, %c0_10] : memref<256x16xf32, #tpu.memory_space<vmem>>, vector<256x16xf32>
    tpu.vector_store %arg11[%c0_9, %c0_10], %10 {strides = array<i32>} : memref<256x16xf32, #tpu.memory_space<vmem>>, vector<256x16xf32>,
    %c1_i32 = arith.constant 1 : i32
    %12 = arith.cmpi eq, %arg1, %c1_i32 : i32
    %13 = arith.extui %12 : i1 to i32
    %c0_i32_11 = arith.constant 0 : i32
    %14 = arith.cmpi ne, %13, %c0_i32_11 : i32
    scf.if %14 {
      %c0_12 = arith.constant 0 : index
      %c0_13 = arith.constant 0 : index
      %15 = vector.load %arg4[%c0_12, %c0_13] : memref<256x32xbf16, #tpu.memory_space<vmem>>, vector<256x32xbf16>
      %c0_14 = arith.constant 0 : index
      %c0_15 = arith.constant 0 : index
      %16 = vector.load %arg6[%c0_14, %c0_15] : memref<32x16xbf16, #tpu.memory_space<vmem>>, vector<32x16xbf16>
      %cst_16 = arith.constant dense<0.000000e+00> : vector<256x16xf32>
      %17 = tpu.matmul %15, %16, %cst_16 {dimension_numbers = #tpu.dot_dimension_numbers<[1], [0], [0], [1], [0, 0, 1, 1], [], []>} : vector<256x32xbf16>, vector<32x16xbf16>, vector<256x16xf32> -> vector<256x16xf32>
      %c0_17 = arith.constant 0 : index
      %c0_18 = arith.constant 0 : index
      %18 = vector.load %arg11[%c0_17, %c0_18] : memref<256x16xf32, #tpu.memory_space<vmem>>, vector<256x16xf32>
      %19 = arith.addf %18, %17 : vector<256x16xf32>
      %c0_19 = arith.constant 0 : index
      %c0_20 = arith.constant 0 : index
      %20 = vector.load %arg7[%c0_19, %c0_20] : memref<1x16xf32, #tpu.memory_space<vmem>>, vector<1x16xf32>
      %21 = vector.broadcast %20 : vector<1x16xf32> to vector<256x16xf32>
      %22 = arith.addf %19, %21 : vector<256x16xf32>
      %cst_21 = arith.constant 0.000000e+00 : f32
      %23 = vector.broadcast %cst_21 : f32 to vector<256x16xf32>
      %24 = arith.cmpf ogt, %22, %23 : vector<256x16xf32>
      %cst_22 = arith.constant 0.00999999977 : f32
      %25 = vector.broadcast %cst_22 : f32 to vector<256x16xf32>
      %26 = arith.mulf %25, %22 : vector<256x16xf32>
      %27 = arith.select %24, %22, %26 : vector<256x16xi1>, vector<256x16xf32>
      %c0_23 = arith.constant 0 : index
      %c0_24 = arith.constant 0 : index
      %28 = vector.load %arg8[%c0_23, %c0_24] : memref<1x16xf32, #tpu.memory_space<vmem>>, vector<1x16xf32>
      %29 = vector.broadcast %28 : vector<1x16xf32> to vector<256x16xf32>
      %30 = arith.mulf %27, %29 : vector<256x16xf32>
      %c0_25 = arith.constant 0 : index
      %c0_26 = arith.constant 0 : index
      %31 = vector.load %arg9[%c0_25, %c0_26] : memref<1x16xf32, #tpu.memory_space<vmem>>, vector<1x16xf32>
      %32 = vector.broadcast %31 : vector<1x16xf32> to vector<256x16xf32>
      %33 = arith.addf %30, %32 : vector<256x16xf32>
      %34 = arith.truncf %33 : vector<256x16xf32> to vector<256x16xbf16>
      %c0_27 = arith.constant 0 : index
      %c0_28 = arith.constant 0 : index
      %35 = vector.load %arg10[%c0_27, %c0_28] : memref<256x16xbf16, #tpu.memory_space<vmem>>, vector<256x16xbf16>
      tpu.vector_store %arg10[%c0_27, %c0_28], %34 {strides = array<i32>} : memref<256x16xbf16, #tpu.memory_space<vmem>>, vector<256x16xbf16>,
    } else {
    }
    return
  }
  func.func @transform_0(%arg0: i32, %arg1: i32) -> (i32, i32) {
    %c0_i32 = arith.constant 0 : i32
    return %arg0, %arg1 : i32, i32
  }
  func.func @transform_1(%arg0: i32, %arg1: i32) -> (i32, i32) {
    %c0_i32 = arith.constant 0 : i32
    %c0_i32_0 = arith.constant 0 : i32
    return %arg1, %c0_i32 : i32, i32
  }
  func.func @transform_2(%arg0: i32, %arg1: i32) -> (i32, i32) {
    %c0_i32 = arith.constant 0 : i32
    %c0_i32_0 = arith.constant 0 : i32
    return %arg0, %c0_i32 : i32, i32
  }
  func.func @transform_3(%arg0: i32, %arg1: i32) -> (i32, i32) {
    %c0_i32 = arith.constant 0 : i32
    %c0_i32_0 = arith.constant 0 : i32
    %c0_i32_1 = arith.constant 0 : i32
    return %c0_i32, %c0_i32_0 : i32, i32
  }
  func.func @transform_4(%arg0: i32, %arg1: i32) -> (i32, i32) {
    %c0_i32 = arith.constant 0 : i32
    %c0_i32_0 = arith.constant 0 : i32
    %c0_i32_1 = arith.constant 0 : i32
    return %c0_i32, %c0_i32_0 : i32, i32
  }
  func.func @transform_5(%arg0: i32, %arg1: i32) -> (i32, i32) {
    %c0_i32 = arith.constant 0 : i32
    %c0_i32_0 = arith.constant 0 : i32
    %c0_i32_1 = arith.constant 0 : i32
    return %c0_i32, %c0_i32_0 : i32, i32
  }
  func.func @transform_6(%arg0: i32, %arg1: i32) -> (i32, i32) {
    %c0_i32 = arith.constant 0 : i32
    %c0_i32_0 = arith.constant 0 : i32
    %c0_i32_1 = arith.constant 0 : i32
    return %c0_i32, %c0_i32_0 : i32, i32
  }
  func.func @transform_7(%arg0: i32, %arg1: i32) -> (i32, i32) {
    %c0_i32 = arith.constant 0 : i32
    %c0_i32_0 = arith.constant 0 : i32
    %c0_i32_1 = arith.constant 0 : i32
    return %c0_i32, %c0_i32_0 : i32, i32
  }
  func.func @transform_8(%arg0: i32, %arg1: i32) -> (i32, i32) {
    %c0_i32 = arith.constant 0 : i32
    %c0_i32_0 = arith.constant 0 : i32
    return %arg0, %c0_i32 : i32, i32
  }
}

</mosaic_0001>

<bundles_post_ra>
// kernel: tpu_custom_call.1
= control target key start
LH: loop header
LB: loop body
LE: loop exit
PB: predicated region body
PF: predicated region fallthrough
CT: control target
= control target key end

     0   :  { %s3423_s0 = inlined_call_operand.hbm [shape: bf16[512,512], index: 0, kind: input, shape index: {}]   ;;  %s3424_s1 = inlined_call_operand.vmem [shape: bf16[512,32], index: 1, kind: input, shape index: {}]   ;;  %s3425_s2 = inlined_call_operand.vmem [shape: bf16[512,32], index: 2, kind: input, shape index: {}]   ;;  %s3426_s3 = inlined_call_operand.vmem [shape: bf16[32,16], index: 3, kind: input, shape index: {}]   ;;  %s3427_s4 = inlined_call_operand.vmem [shape: bf16[32,16], index: 4, kind: input, shape index: {}]   ;;  %s3428_s5 = inlined_call_operand.vmem [shape: f32[1,16], index: 5, kind: input, shape index: {}]   ;;  %s3429_s6 = inlined_call_operand.vmem [shape: f32[1,16], index: 6, kind: input, shape index: {}]   ;;  %s3430_s7 = inlined_call_operand.vmem [shape: f32[1,16], index: 7, kind: input, shape index: {}]   ;;  %s3431_s8 = inlined_call_operand.vmem [shape: bf16[512,16], index: 8, kind: output, shape index: {}]  }
   0x1   :  { %3434 = sst [smem:[#allocation7_spill]] %s3427_s4 }
   0x2   :  { %3435 = sst [smem:[#allocation8_spill]] %s3428_s5 }
   0x3   :  { %3436 = sst [smem:[#allocation9_spill]] %s3429_s6 }
   0x4   :  { %3437 = sst [smem:[#allocation10_spill]] %s3430_s7 }
   0x5   :  { %13 = vsyncpa [#allocation4], 0 }
   0x6   :  { %15 = vsyncpa [#allocation4 + $0x1], 0  ;;  %s2853_s27 = smov 0   ;;  %s2855_s28 = smov 0  }
   0x7   :  { %s2857_s29 = smov 0   ;;  %s2859_s30 = smov 0  }
   0x8   :  { %s2861_s9 = smov 0   ;;  %s2863_s10 = smov 0  }
   0x9   :  { %s2865_s11 = smov 0   ;;  %s2867_s12 = smov 0  }
   0xa LB: > { %s2117_s13 = sadd.s32 4294967295, %s2801_s12   ;;  %s30_s14 = sadd.s32 1, %s2793_s10  ;;  %s2801_s12 = sphi %s2867_s12, %s21_s12   ;;  %s2797_s11 = sphi %s2865_s11, %s3453_s11   ;;  %s2793_s10 = sphi %s2863_s10, %s3452_s10   ;;  %s2789_s9 = sphi %s2861_s9, %s3451_s9   ;;  %s2785_s30 = sphi %s2859_s30, %s3450_s30   ;;  %s2781_s29 = sphi %s2857_s29, %s3449_s29   ;;  %s2777_s28 = sphi %s2855_s28, %s3448_s28   ;;  %s2773_s27 = sphi %s2853_s27, %s3447_s27  }
   0xb   : > { %p31_p0 = scmp.ge.s32.totalorder %s30_s14, 2  ;;  %s33_s15 = sadd.s32 1, %s2797_s11 }
   0xc   : > { %s42_s16 = sadd.s32 1, %s2781_s29  ;;  %p49_p1 = scmp.ne.s32.totalorder %s2781_s29, %s2777_s28 }
   0xd   : > { %s3455_s14 = smov (%p31_p0, %s30_s14), 0  ;;  %s3457_s15 = smov (!%p31_p0, %s33_s15), %s2797_s11 }
   0xe   : > { %3438 = sst [smem:[#allocation6_spill]] %s3455_s14  ;;  %s38_s17 = ssub.s32 %s2793_s10, %s3455_s14 }
   0xf   : > { %p50_p2 = scmp.eq.s32.totalorder %s2801_s12, 0  ;;  %p35_p3 = scmp.ge.s32.totalorder %s3457_s15, 2 }
  0x10   : > { %p55_p4 = scmp.ne.s32.totalorder %s2777_s28, %s2773_s27  ;;  %p56_p6 = scmp.eq.s32.totalorder %s2117_s13, 0 }
  0x11   : > { %p2904_p5 = por %p50_p2, %p49_p1  ;;  %s3459_s15 = smov (%p35_p3, %s3457_s15), 0 }
  0x12   : > { %p2910_p7 = por %p56_p6, %p55_p4  ;;  %s37_s20 = ssub.s32 %s2797_s11, %s3459_s15 }
  0x13   : > { %p2552_p8 = scmp.lt.s32.totalorder %s2801_s12, 4  ;;  %s39_s21 = sor.u32 %s38_s17, %s37_s20 }
  0x14   : > { %s277_s22 = sand.u32 1, %s2781_s29   ;;  %p40_p9 = scmp.eq.s32.totalorder %s39_s21, 0 }
  0x15   : > { %s2121_s23 = sshll.u32 %s277_s22, 8  ;;  %s2123_s24 = sshll.u32 %s2793_s10, 1 }
  0x16   : > { %s2920_s25 = scalar_select %p40_p9, %s2781_s29, %s42_s16  }
  0x17   : > { %s2273_s26 = sshll.u32 %s2797_s11, 7  ;;  %s281_s13 = scalar_lea.vmem [#allocation3], %s2121_s23 }
  0x18   : > { %s288_s27 = sadd.s32 %s2273_s26, %s2123_s24  ;;  %s291_s14 = sshll.u32 %s281_s13, 4  ;;  %s2923_s14 = int_to_ptr.vmem [resolvable:$true] %s291_s14 }
  0x19   : > { %s2125_s7 = sshll.u32 %s288_s27, 6  ;;  %p2934_p10 = pnand %p2552_p8, %p2904_p5 }
  0x1a   : > { %s2928_s4 = scalar_lea.hbm %s3423_s0, %s2125_s7  ;;  %s2938_s17 = scalar_lea.sflag [#allocation4], %s277_s22 }
  0x1b   : > { %s2705_s20 = scalar_lea.hbm %s2928_s4, 4096  ;;  %p2707_p12 = pneg %p2934_p10 }
  0x1c   : > { %p2706_p11 = scmp.ne.s32.totalorder %s2928_s4, %s2705_s20  ;;  %s2710_s7 = scalar_lea.hbm %s3423_s0, 16384 }
  0x1d   : > { %p2711_p1 = scmp.lt.u32.totalorder %s2928_s4, %s3423_s0  ;;  %p2712_p2 = scmp.lt.u32.totalorder %s2710_s7, %s2705_s20 }
  0x1e   : > { %p2708_p13 = pnand %p2707_p12, %p2706_p11  ;;  %p2714_p4 = scmp.lt.u32.totalorder %s2705_s20, %s2928_s4 }
  0x1f   : > { %p2713_p3 = por %p2712_p2, %p2711_p1 }
  0x20   : > { %p2709_p0 = pneg %p2708_p13 }
  0x21   : > { %p2715_p5 = por %p2714_p4, %p2713_p3 }
  0x23   : > { %p2716_p6 = pnand %p2715_p5, %p2709_p0 }
  0x25   : > { %2719 = shalt.err (!%p2716_p6)
}
  0x26   : > { %s2720_s22 = scalar_lea.vmem %s2923_s14, 4096  ;;  %s2803_s23 = smov [#allocation3]  }
  0x27   : > { %p2721_p8 = scmp.ne.s32.totalorder %s2923_s14, %s2720_s22  ;;  %s2725_s24 = sshll.u32 %s2803_s23, 4  ;;  %s2726_s24 = int_to_ptr.vmem [resolvable:$false] %s2725_s24 }
  0x28   : > { %s2727_s26 = scalar_lea.vmem %s2726_s24, 8192  ;;  %p2728_p13 = scmp.lt.s32.totalorder %s2923_s14, %s2726_s24 }
  0x29   : > { %p2723_p9 = pnand %p2721_p8, %p2707_p12  ;;  %p2729_p1 = scmp.lt.s32.totalorder %s2727_s26, %s2720_s22 }
  0x2b   : > { %p2724_p11 = pneg %p2723_p9  ;;  %p2730_p2 = por %p2729_p1, %p2728_p13 }
  0x2d   : > { %p2731_p3 = pnand %p2730_p2, %p2724_p11 }
  0x2f   : > { %2734 = shalt.err (!%p2731_p3)
}
  0x30   : > { %s2804_s27 = smov 256   ;;  %s2805_s13 = smov 128  }
  0x31   : > { %s2806_s20 = smov 8   ;;  %p2126_p12 = scmp.ge.s32.totalorder %s2801_s12, 1 }
  0x32   : > { %2551 = dma.hbm_to_vmem [thread:$0]  (!%p2934_p10), %s2928_s4, 4096, %s2923_s14, %s2938_s17, %s2804_s27, %s2805_s13, %s2806_s20  }
  0x33   : > { %p317_p0 = scmp.lt.s32.totalorder %s2801_s12, 5 }
  0x35   : > { %p318_p4 = pnand %p2126_p12, %p317_p0 }
  0x36   : > { %s323_s5 = sand.u32 (!%p318_p4), 1, %s2777_s28  }
  0x37   : > { %321 = sbr.rel (%p318_p4) target bundleno = 917 (0x395), region = 52  ;;  %s2127_s6 = sshll.u32 (!%p318_p4), %s323_s5, 8 }
  0x38   : > { %s324_s7 = scalar_lea.sflag (!%p318_p4), [#allocation4], %s323_s5  ;;  %s2969_s18 = scalar_lea.vmem (!%p318_p4), [#allocation3], %s2127_s6 }
  0x3e   : > { %2768 = dma.done.wait (%p2910_p7), %s324_s7, 4096  }
  0x3f   : > { %2770 = vsyncadd (%p2910_p7), %s324_s7, 4294963200  ;;  %s2128_s16 = sshll.u32 %s2785_s30, 5  ;;  %s2130_s4 = sshll.u32 %s2789_s9, 5 }
  0x40   : > { %p373_p10 = scmp.lt.s32.totalorder %s2128_s16, 63  ;;  %p379_p5 = scmp.lt.s32.totalorder %s2130_s4, 63 }
  0x41   : > { %p2134_p7 = scmp.ne.s32.totalorder %s2785_s30, 0 }
  0x42   : > { %s3461_s16 = smov (!%p373_p10, %s2128_s16), 63  ;;  %s3463_s4 = smov (!%p379_p5, %s2130_s4), 63 }
  0x43   : > { %s2129_s14 = sshll.u32 %s3461_s16, 2  ;;  %s2131_s23 = sshll.u32 %s3463_s4, 2  ;;  %vm395_vm0 = vcmask (!%p2134_p7), 130048   ;;  %v2807_v0 = vmov (!%p2134_p7), 0.0  }
  0x44   : > { %s2980_s22 = scalar_lea.vmem %s3424_s1, %s2129_s14  ;;  %s2985_s19 = scalar_lea.vmem %s3425_s2, %s2131_s23  ;;  %396 = vst.msk [vmem:[#allocation2] sm:$0xff] (!%p2134_p7), %vm395_vm0, %v2807_v0  ;;  %397 = vst.msk [vmem:[#allocation2 + $0x8] sm:$0xff] (!%p2134_p7), %vm395_vm0, %v2807_v0 }
  0x45   : > { %s2990_s9 = scalar_lea.vmem %s3431_s8, %s2131_s23  ;;  %394 = sbr.rel (%p2134_p7) target bundleno = 84 (0x54), region = 60  ;;  %398 = vst.msk [vmem:[#allocation2 + $0x10] sm:$0xff] (!%p2134_p7), %vm395_vm0, %v2807_v0  ;;  %399 = vst.msk [vmem:[#allocation2 + $0x18] sm:$0xff] (!%p2134_p7), %vm395_vm0, %v2807_v0 }
  0x46   : > { %400 = vst.msk [vmem:[#allocation2 + $0x20] sm:$0xff] (!%p2134_p7), %vm395_vm0, %v2807_v0  ;;  %401 = vst.msk [vmem:[#allocation2 + $0x28] sm:$0xff] (!%p2134_p7), %vm395_vm0, %v2807_v0 }
  0x47   : > { %402 = vst.msk [vmem:[#allocation2 + $0x30] sm:$0xff] (!%p2134_p7), %vm395_vm0, %v2807_v0  ;;  %403 = vst.msk [vmem:[#allocation2 + $0x38] sm:$0xff] (!%p2134_p7), %vm395_vm0, %v2807_v0 }
  0x48   : > { %404 = vst.msk [vmem:[#allocation2 + $0x40] sm:$0xff] (!%p2134_p7), %vm395_vm0, %v2807_v0  ;;  %405 = vst.msk [vmem:[#allocation2 + $0x48] sm:$0xff] (!%p2134_p7), %vm395_vm0, %v2807_v0 }
  0x49   : > { %406 = vst.msk [vmem:[#allocation2 + $0x50] sm:$0xff] (!%p2134_p7), %vm395_vm0, %v2807_v0  ;;  %407 = vst.msk [vmem:[#allocation2 + $0x58] sm:$0xff] (!%p2134_p7), %vm395_vm0, %v2807_v0 }
  0x4a   : > { %408 = vst.msk [vmem:[#allocation2 + $0x60] sm:$0xff] (!%p2134_p7), %vm395_vm0, %v2807_v0  ;;  %409 = vst.msk [vmem:[#allocation2 + $0x68] sm:$0xff] (!%p2134_p7), %vm395_vm0, %v2807_v0 }
  0x4b   : > { %410 = vst.msk [vmem:[#allocation2 + $0x70] sm:$0xff] (!%p2134_p7), %vm395_vm0, %v2807_v0  ;;  %411 = vst.msk [vmem:[#allocation2 + $0x78] sm:$0xff] (!%p2134_p7), %vm395_vm0, %v2807_v0 }
  0x4c   : > { %412 = vst.msk [vmem:[#allocation2 + $0x80] sm:$0xff] %vm395_vm0, %v2807_v0  ;;  %413 = vst.msk [vmem:[#allocation2 + $0x88] sm:$0xff] %vm395_vm0, %v2807_v0 }
  0x4d   : > { %414 = vst.msk [vmem:[#allocation2 + $0x90] sm:$0xff] %vm395_vm0, %v2807_v0  ;;  %415 = vst.msk [vmem:[#allocation2 + $0x98] sm:$0xff] %vm395_vm0, %v2807_v0 }
  0x4e   : > { %416 = vst.msk [vmem:[#allocation2 + $0xa0] sm:$0xff] %vm395_vm0, %v2807_v0  ;;  %417 = vst.msk [vmem:[#allocation2 + $0xa8] sm:$0xff] %vm395_vm0, %v2807_v0 }
  0x4f   : > { %418 = vst.msk [vmem:[#allocation2 + $0xb0] sm:$0xff] %vm395_vm0, %v2807_v0  ;;  %419 = vst.msk [vmem:[#allocation2 + $0xb8] sm:$0xff] %vm395_vm0, %v2807_v0 }
  0x50   : > { %420 = vst.msk [vmem:[#allocation2 + $0xc0] sm:$0xff] %vm395_vm0, %v2807_v0  ;;  %421 = vst.msk [vmem:[#allocation2 + $0xc8] sm:$0xff] %vm395_vm0, %v2807_v0 }
  0x51   : > { %422 = vst.msk [vmem:[#allocation2 + $0xd0] sm:$0xff] %vm395_vm0, %v2807_v0  ;;  %423 = vst.msk [vmem:[#allocation2 + $0xd8] sm:$0xff] %vm395_vm0, %v2807_v0 }
  0x52   : > { %424 = vst.msk [vmem:[#allocation2 + $0xe0] sm:$0xff] %vm395_vm0, %v2807_v0  ;;  %425 = vst.msk [vmem:[#allocation2 + $0xe8] sm:$0xff] %vm395_vm0, %v2807_v0 }
  0x53   : > { %426 = vst.msk [vmem:[#allocation2 + $0xf0] sm:$0xff] %vm395_vm0, %v2807_v0  ;;  %427 = vst.msk [vmem:[#allocation2 + $0xf8] sm:$0xff] %vm395_vm0, %v2807_v0 }
  0x54 PF: > { %v2621_v1 = vld [vmem:[%s3426_s3] sm:$0xff]   ;;  %v2622_v2 = vld [vmem:[%s3426_s3 + $0x8] sm:$0xff]   ;;  %vm556_vm1 = vcmask 261120   ;;  %v2625_v5 = vld [vmem:[%s2980_s22 + $0x10] sm:$0xff]   ;;  %vm1199_vm2 = vcmask 130048   ;;  %p2201_p6 = scmp.ne.s32.totalorder %s2785_s30, 1 }
  0x55   : > { %2454 = vmatprep.subr.bf16.mxu0 %v2621_v1  ;;  %v2623_v3 = vld [vmem:[%s2980_s22] sm:$0xff]   ;;  %v2624_v4 = vld [vmem:[%s2980_s22 + $0x8] sm:$0xff]   ;;  %v2626_v6 = vld [vmem:[%s2980_s22 + $0x18] sm:$0xff]   ;;  %s3442_s4 = sld [smem:[#allocation7_spill]] (!%p2201_p6)  ;;  %vm1978_vm3 = vcmask (!%p2201_p6), 125952   ;;  %s3444_s26 = sld [smem:[#allocation9_spill]] (!%p2201_p6) }
  0x56   : > { %2455 = vmatpush3.bf16.msra.mxu0 %v2621_v1  ;;  %2458 = vmatprep.mubr.msk.bf16.mxu0 %vm556_vm1, %v2623_v3  ;;  %v2627_v7 = vld [vmem:[%s2980_s22 + $0x20] sm:$0xff]   ;;  %v2628_v8 = vld [vmem:[%s2980_s22 + $0x28] sm:$0xff]   ;;  %v2629_v9 = vld [vmem:[%s2980_s22 + $0x30] sm:$0xff]   ;;  %s3445_s13 = sld [smem:[#allocation10_spill]] (!%p2201_p6) }
  0x57   : > { %2456 = vmatprep.subr.bf16.mxu0 %v2622_v2  ;;  %v2630_v10 = vld [vmem:[%s2980_s22 + $0x38] sm:$0xff]   ;;  %v2631_v11 = vld [vmem:[%s2980_s22 + $0x40] sm:$0xff]   ;;  %v2632_v12 = vld [vmem:[%s2980_s22 + $0x48] sm:$0xff]  }
  0x58   : > { %v2633_v13 = vld [vmem:[%s2980_s22 + $0x50] sm:$0xff]   ;;  %v2634_v14 = vld [vmem:[%s2980_s22 + $0x58] sm:$0xff]   ;;  %v2635_v15 = vld [vmem:[%s2980_s22 + $0x60] sm:$0xff]  }
  0x59   : > { %v2636_v16 = vld [vmem:[%s2980_s22 + $0x68] sm:$0xff]   ;;  %v2637_v17 = vld [vmem:[%s2980_s22 + $0x70] sm:$0xff]   ;;  %v2638_v18 = vld [vmem:[%s2980_s22 + $0x78] sm:$0xff]   ;;  %s3443_s22 = sld [smem:[#allocation8_spill]] (!%p2201_p6) }
  0x5a   : > { %2457 = vmatpush3.bf16.msra.mxu0 %v2622_v2  ;;  %v2641_v19 = vld [vmem:[%s2969_s18 + $0x54] ss:$8 sps:$4 sm:$0xff]   ;;  %v2659_v20 = vld [vmem:[%s2969_s18 + $0x4] ss:$8 sps:$4 sm:$0xff]  }
  0x5b   : > { %1078 = vmatprep.mubr.bf16.mxu1 %v2641_v19  ;;  %v2651_v19 = vld [vmem:[%s2969_s18 + $0x94] ss:$8 sps:$4 sm:$0xff]  }
  0x5d   : > { %2459 = vmatmul.mubr.msk.bf16.vlgmr.msra.gmra.mrb[0].mxu0 %vm556_vm1, %v2624_v4 }
  0x5e   : > { %2462 = vmatprep.mubr.msk.bf16.mxu0 %vm556_vm1, %v2625_v5  ;;  %v2639_v5 = vld [vmem:[%s2969_s18 + $0x50] ss:$8 sps:$4 sm:$0xff]  }
  0x65   : > { %2463 = vmatmul.mubr.msk.bf16.gmra.mrb[4].mxu0 %vm556_vm1, %v2626_v6  ;;  %v2657_v6 = vld [vmem:[%s2969_s18] ss:$8 sps:$4 sm:$0xff]  }
  0x66   : > { %2466 = vmatprep.mubr.msk.bf16.mxu0 %vm556_vm1, %v2627_v7  ;;  %v2642_v7 = vld [vmem:[%s2969_s18 + $0x64] ss:$8 sps:$4 sm:$0xff]  }
  0x6d   : > { %2467 = vmatmul.mubr.msk.bf16.gmra.mrb[8].mxu0 %vm556_vm1, %v2628_v8  ;;  %v2663_v8 = vld [vmem:[%s2969_s18 + $0x14] ss:$8 sps:$4 sm:$0xff]  }
  0x6e   : > { %2470 = vmatprep.mubr.msk.bf16.mxu0 %vm556_vm1, %v2629_v9  ;;  %v2644_v9 = vld [vmem:[%s2969_s18 + $0x60] ss:$8 sps:$4 sm:$0xff]  }
  0x75   : > { %2471 = vmatmul.mubr.msk.bf16.gmra.mrb[12].mxu0 %vm556_vm1, %v2630_v10  ;;  %v2665_v10 = vld [vmem:[%s2969_s18 + $0x10] ss:$8 sps:$4 sm:$0xff]  }
  0x76   : > { %2474 = vmatprep.mubr.msk.bf16.mxu0 %vm556_vm1, %v2631_v11  ;;  %v2645_v11 = vld [vmem:[%s2969_s18 + $0x74] ss:$8 sps:$4 sm:$0xff]  }
  0x7d   : > { %2475 = vmatmul.mubr.msk.bf16.gmra.mrb[16].mxu0 %vm556_vm1, %v2632_v12  ;;  %v2669_v12 = vld [vmem:[%s2969_s18 + $0x24] ss:$8 sps:$4 sm:$0xff]  }
  0x7e   : > { %2478 = vmatprep.mubr.msk.bf16.mxu0 %vm556_vm1, %v2633_v13  ;;  %v2647_v13 = vld [vmem:[%s2969_s18 + $0x70] ss:$8 sps:$4 sm:$0xff]  }
  0x85   : > { %2479 = vmatmul.mubr.msk.bf16.gmra.mrb[20].mxu0 %vm556_vm1, %v2634_v14  ;;  %v2671_v14 = vld [vmem:[%s2969_s18 + $0x20] ss:$8 sps:$4 sm:$0xff]  }
  0x86   : > { %2482 = vmatprep.mubr.msk.bf16.mxu0 %vm556_vm1, %v2635_v15  ;;  %v2648_v15 = vld [vmem:[%s2969_s18 + $0x84] ss:$8 sps:$4 sm:$0xff]  }
  0x8d   : > { %2483 = vmatmul.mubr.msk.bf16.gmra.mrb[24].mxu0 %vm556_vm1, %v2636_v16  ;;  %v2675_v16 = vld [vmem:[%s2969_s18 + $0x34] ss:$8 sps:$4 sm:$0xff]  }
  0x8e   : > { %2486 = vmatprep.mubr.msk.bf16.mxu0 %vm556_vm1, %v2637_v17  ;;  %v2650_v17 = vld [vmem:[%s2969_s18 + $0x80] ss:$8 sps:$4 sm:$0xff]  }
  0x95   : > { %2487 = vmatmul.mubr.msk.bf16.gmra.mrb[28].mxu0 %vm556_vm1, %v2638_v18  ;;  %v2677_v18 = vld [vmem:[%s2969_s18 + $0x30] ss:$8 sps:$4 sm:$0xff]  }
  0x96   : > { %1038 = vmatprep.mubr.bf16.mxu0 %v2659_v20  ;;  %v2681_v20 = vld [vmem:[%s2969_s18 + $0x44] ss:$8 sps:$4 sm:$0xff]  }
 0x130   : > { %v2460_v21 = vpop.f32.mrb[0].mxu0 }
 0x131   : > { %v639_v22 = vpop.f32.mrb[1].mxu0 }
 0x132   : > { %v2461_v23 = vpop.f32.mrb[2].mxu0 }
 0x133   : > { %v831_v24 = vpack.c.bf16 %v2461_v23, %v2460_v21  ;;  %v642_v25 = vpop.f32.mrb[3].mxu0  ;;  %v2653_v21 = vld [vmem:[%s2969_s18 + $0x90] ss:$8 sps:$4 sm:$0xff]   ;;  %v2654_v23 = vld [vmem:[%s2969_s18 + $0xa4] ss:$8 sps:$4 sm:$0xff]  }
 0x134   : > { %v830_v26 = vpack.c.bf16 %v642_v25, %v639_v22  ;;  %v2683_v22 = vld [vmem:[%s2969_s18 + $0x40] ss:$8 sps:$4 sm:$0xff]   ;;  %v2660_v25 = vld [vmem:[%s2969_s18 + $0xb4] ss:$8 sps:$4 sm:$0xff]  }
 0x138   : > { %v2464_v27 = vpop.f32.mrb[4].mxu0 }
 0x139   : > { %v655_v28 = vpop.f32.mrb[5].mxu0 }
 0x13a   : > { %v2465_v29 = vpop.f32.mrb[6].mxu0 }
 0x13b   : > { %v833_v30 = vpack.c.bf16 %v2465_v29, %v2464_v27  ;;  %v658_v31 = vpop.f32.mrb[7].mxu0  ;;  %v2666_v27 = vld [vmem:[%s2969_s18 + $0xc4] ss:$8 sps:$4 sm:$0xff]   ;;  %v2672_v29 = vld [vmem:[%s2969_s18 + $0xd4] ss:$8 sps:$4 sm:$0xff]  }
 0x13c   : > { %v832_v32 = vpack.c.bf16 %v658_v31, %v655_v28  ;;  %v2668_v28 = vld [vmem:[%s2969_s18 + $0xc0] ss:$8 sps:$4 sm:$0xff]   ;;  %v2678_v31 = vld [vmem:[%s2969_s18 + $0xe4] ss:$8 sps:$4 sm:$0xff]  }
 0x140   : > { %v2468_v33 = vpop.f32.mrb[8].mxu0 }
 0x141   : > { %v671_v34 = vpop.f32.mrb[9].mxu0 }
 0x142   : > { %v2469_v35 = vpop.f32.mrb[10].mxu0 }
 0x143   : > { %v835_v36 = vpack.c.bf16 %v2469_v35, %v2468_v33  ;;  %v674_v37 = vpop.f32.mrb[11].mxu0  ;;  %v2684_v33 = vld [vmem:[%s2969_s18 + $0xf4] ss:$8 sps:$4 sm:$0xff]  }
 0x144   : > { %v834_v38 = vpack.c.bf16 %v674_v37, %v671_v34  ;;  %v2686_v34 = vld [vmem:[%s2969_s18 + $0xf0] ss:$8 sps:$4 sm:$0xff]  }
 0x145   : > { %v776_v37 = vld [vmem:[#allocation2 + $0x50] sm:$0xff] }
 0x148   : > { %v2472_v39 = vpop.f32.mrb[12].mxu0 }
 0x149   : > { %v687_v40 = vpop.f32.mrb[13].mxu0 }
 0x14a   : > { %v2473_v41 = vpop.f32.mrb[14].mxu0 }
 0x14b   : > { %v837_v42 = vpack.c.bf16 %v2473_v41, %v2472_v39  ;;  %v690_v43 = vpop.f32.mrb[15].mxu0  ;;  %v766_v39 = vld [vmem:[#allocation2] sm:$0xff] }
 0x14c   : > { %v836_v44 = vpack.c.bf16 %v690_v43, %v687_v40 }
 0x150   : > { %v2476_v45 = vpop.f32.mrb[16].mxu0 }
 0x151   : > { %v703_v46 = vpop.f32.mrb[17].mxu0 }
 0x152   : > { %v2477_v47 = vpop.f32.mrb[18].mxu0 }
 0x153   : > { %v839_v48 = vpack.c.bf16 %v2477_v47, %v2476_v45  ;;  %v706_v49 = vpop.f32.mrb[19].mxu0  ;;  %v777_v45 = vld [vmem:[#allocation2 + $0x58] sm:$0xff]  ;;  %v767_v47 = vld [vmem:[#allocation2 + $0x8] sm:$0xff] }
 0x154   : > { %v838_v50 = vpack.c.bf16 %v706_v49, %v703_v46 }
 0x156   : > { %2324 = vmatprep.subr.bf16.mxu0 %v838_v50  ;;  %2526 = vmatprep.subr.bf16.mxu1 %v838_v50 }
 0x157   : > { %2325 = vmatpush3.bf16.msra.mxu0 %v830_v26  ;;  %2534 = vmatpush3.bf16.msra.mxu1 %v830_v26  ;;  %v2662_v26 = vld [vmem:[%s2969_s18 + $0xb0] ss:$8 sps:$4 sm:$0xff]  }
 0x158   : > { %v2480_v51 = vpop.f32.mrb[20].mxu0  ;;  %2326 = vmatprep.subr.bf16.mxu0 %v839_v48  ;;  %2527 = vmatprep.subr.bf16.mxu1 %v839_v48 }
 0x159   : > { %v719_v52 = vpop.f32.mrb[21].mxu0 }
 0x15a   : > { %v2481_v53 = vpop.f32.mrb[22].mxu0 }
 0x15b   : > { %v841_v54 = vpack.c.bf16 %v2481_v53, %v2480_v51  ;;  %v722_v55 = vpop.f32.mrb[23].mxu0  ;;  %2327 = vmatpush3.bf16.msra.mxu0 %v831_v24  ;;  %2535 = vmatpush3.bf16.msra.mxu1 %v831_v24  ;;  %v2656_v24 = vld [vmem:[%s2969_s18 + $0xa0] ss:$8 sps:$4 sm:$0xff]  }
 0x15c   : > { %v840_v56 = vpack.c.bf16 %v722_v55, %v719_v52 }
 0x15e   : > { %2328 = vmatprep.subr.bf16.mxu0 %v840_v56  ;;  %2528 = vmatprep.subr.bf16.mxu1 %v840_v56 }
 0x15f   : > { %2329 = vmatpush3.bf16.msra.mxu0 %v832_v32  ;;  %2536 = vmatpush3.bf16.msra.mxu1 %v832_v32  ;;  %v2680_v32 = vld [vmem:[%s2969_s18 + $0xe0] ss:$8 sps:$4 sm:$0xff]  }
 0x160   : > { %v2484_v57 = vpop.f32.mrb[24].mxu0  ;;  %2330 = vmatprep.subr.bf16.mxu0 %v841_v54  ;;  %2529 = vmatprep.subr.bf16.mxu1 %v841_v54 }
 0x161   : > { %v735_v58 = vpop.f32.mrb[25].mxu0 }
 0x162   : > { %v2485_v59 = vpop.f32.mrb[26].mxu0 }
 0x163   : > { %v843_v60 = vpack.c.bf16 %v2485_v59, %v2484_v57  ;;  %v738_v61 = vpop.f32.mrb[27].mxu0  ;;  %2331 = vmatpush3.bf16.msra.mxu0 %v833_v30  ;;  %2537 = vmatpush3.bf16.msra.mxu1 %v833_v30  ;;  %v2674_v30 = vld [vmem:[%s2969_s18 + $0xd0] ss:$8 sps:$4 sm:$0xff]   ;;  %v778_v57 = vld [vmem:[#allocation2 + $0x60] sm:$0xff] }
 0x164   : > { %v842_v62 = vpack.c.bf16 %v738_v61, %v735_v58  ;;  %v768_v59 = vld [vmem:[#allocation2 + $0x10] sm:$0xff] }
 0x166   : > { %2332 = vmatprep.subr.bf16.mxu0 %v842_v62  ;;  %2530 = vmatprep.subr.bf16.mxu1 %v842_v62 }
 0x167   : > { %2333 = vmatpush3.bf16.msra.mxu0 %v834_v38  ;;  %2538 = vmatpush3.bf16.msra.mxu1 %v834_v38 }
 0x168   : > { %v2488_v63 = vpop.f32.mrb[28].mxu0  ;;  %2334 = vmatprep.subr.bf16.mxu0 %v843_v60  ;;  %2531 = vmatprep.subr.bf16.mxu1 %v843_v60 }
 0x169   : > { %v751_v0 = vpop.f32.mrb[29].mxu0 }
 0x16a   : > { %v2489_v1 = vpop.f32.mrb[30].mxu0 }
 0x16b   : > { %v845_v2 = vpack.c.bf16 %v2489_v1, %v2488_v63  ;;  %v754_v3 = vpop.f32.mrb[31].mxu0  ;;  %2335 = vmatpush3.bf16.msra.mxu0 %v835_v36  ;;  %2539 = vmatpush3.bf16.msra.mxu1 %v835_v36  ;;  %v779_v1 = vld [vmem:[#allocation2 + $0x68] sm:$0xff] }
 0x16c   : > { %v844_v4 = vpack.c.bf16 %v754_v3, %v751_v0  ;;  %v769_v3 = vld [vmem:[#allocation2 + $0x18] sm:$0xff] }
 0x16e   : > { %2336 = vmatprep.subr.bf16.mxu0 %v844_v4  ;;  %2532 = vmatprep.subr.bf16.mxu1 %v844_v4 }
 0x16f   : > { %2337 = vmatpush3.bf16.msra.mxu0 %v836_v44  ;;  %2540 = vmatpush3.bf16.msra.mxu1 %v836_v44 }
 0x170   : > { %2338 = vmatprep.subr.bf16.mxu0 %v845_v2  ;;  %2533 = vmatprep.subr.bf16.mxu1 %v845_v2 }
 0x173   : > { %2339 = vmatpush3.bf16.msra.mxu0 %v837_v42  ;;  %2541 = vmatpush3.bf16.msra.mxu1 %v837_v42 }
 0x176   : > { %1079 = vmatmul.mubr.bf16.vlgmr.msra.gmra.mrb[0].mxu1 %v2639_v5  ;;  %1039 = vmatmul.mubr.bf16.vlgmr.msra.gmra.mrb[32].mxu0 %v2657_v6 }
 0x177   : > { %1086 = vmatprep.mubr.bf16.mxu1 %v2642_v7  ;;  %1046 = vmatprep.mubr.bf16.mxu0 %v2663_v8 }
 0x17e   : > { %1087 = vmatmul.mubr.bf16.gmra.mrb[4].mxu1 %v2644_v9  ;;  %1047 = vmatmul.mubr.bf16.gmra.mrb[36].mxu0 %v2665_v10 }
 0x17f   : > { %1094 = vmatprep.mubr.bf16.mxu1 %v2645_v11  ;;  %1054 = vmatprep.mubr.bf16.mxu0 %v2669_v12 }
 0x186   : > { %1095 = vmatmul.mubr.bf16.gmra.mrb[8].mxu1 %v2647_v13  ;;  %1055 = vmatmul.mubr.bf16.gmra.mrb[40].mxu0 %v2671_v14  ;;  %v780_v13 = vld [vmem:[#allocation2 + $0x70] sm:$0xff] }
 0x187   : > { %1102 = vmatprep.mubr.bf16.mxu1 %v2648_v15  ;;  %1062 = vmatprep.mubr.bf16.mxu0 %v2675_v16  ;;  %v770_v15 = vld [vmem:[#allocation2 + $0x20] sm:$0xff] }
 0x18e   : > { %1103 = vmatmul.mubr.bf16.gmra.mrb[12].mxu1 %v2650_v17  ;;  %1063 = vmatmul.mubr.bf16.gmra.mrb[44].mxu0 %v2677_v18 }
 0x18f   : > { %1110 = vmatprep.mubr.bf16.mxu1 %v2651_v19  ;;  %1070 = vmatprep.mubr.bf16.mxu0 %v2681_v20 }
 0x196   : > { %1111 = vmatmul.mubr.bf16.gmra.mrb[16].mxu1 %v2653_v21  ;;  %1071 = vmatmul.mubr.bf16.gmra.mrb[48].mxu0 %v2683_v22  ;;  %v781_v21 = vld [vmem:[#allocation2 + $0x78] sm:$0xff] }
 0x197   : > { %1118 = vmatprep.mubr.bf16.mxu1 %v2654_v23  ;;  %v771_v23 = vld [vmem:[#allocation2 + $0x28] sm:$0xff] }
 0x19e   : > { %1119 = vmatmul.mubr.bf16.gmra.mrb[20].mxu1 %v2656_v24 }
 0x19f   : > { %1126 = vmatprep.mubr.bf16.mxu1 %v2660_v25 }
 0x1a6   : > { %1127 = vmatmul.mubr.bf16.gmra.mrb[24].mxu1 %v2662_v26 }
 0x1a7   : > { %1134 = vmatprep.mubr.bf16.mxu1 %v2666_v27 }
 0x1ae   : > { %1135 = vmatmul.mubr.bf16.gmra.mrb[28].mxu1 %v2668_v28 }
 0x1af   : > { %1142 = vmatprep.mubr.bf16.mxu1 %v2672_v29 }
 0x1b6   : > { %1143 = vmatmul.mubr.bf16.gmra.mrb[32].mxu1 %v2674_v30 }
 0x1b7   : > { %1150 = vmatprep.mubr.bf16.mxu1 %v2678_v31 }
 0x1be   : > { %1151 = vmatmul.mubr.bf16.gmra.mrb[36].mxu1 %v2680_v32 }
 0x1bf   : > { %1158 = vmatprep.mubr.bf16.mxu1 %v2684_v33  ;;  %v782_v33 = vld [vmem:[#allocation2 + $0x80] sm:$0xff] }
 0x1c6   : > { %1159 = vmatmul.mubr.bf16.gmra.mrb[40].mxu1 %v2686_v34 }
 0x249   : > { %v2370_v35 = vpop.f32.mrb[0].mxu1  ;;  %v2340_v36 = vpop.f32.mrb[32].mxu0 }
 0x24a   : > { %v2371_v38 = vpop.f32.mrb[1].mxu1  ;;  %v2341_v40 = vpop.f32.mrb[33].mxu0 }
 0x24b   : > { %v2372_v41 = vadd.f32 %v2371_v38, %v2370_v35  ;;  %v2373_v42 = vpop.f32.mrb[2].mxu1  ;;  %v2342_v43 = vadd.f32 %v2341_v40, %v2340_v36  ;;  %v2343_v44 = vpop.f32.mrb[34].mxu0  ;;  %v772_v35 = vld [vmem:[#allocation2 + $0x30] sm:$0xff] }
 0x24c   : > { %v2374_v46 = vpop.f32.mrb[3].mxu1  ;;  %v2344_v48 = vpop.f32.mrb[35].mxu0 }
 0x24d   : > { %v1177_v49 = vadd.f32 %v2372_v41, %v776_v37  ;;  %v2375_v50 = vadd.f32 %v2374_v46, %v2373_v42  ;;  %v1167_v51 = vadd.f32 %v2342_v43, %v766_v39  ;;  %v2345_v52 = vadd.f32 %v2344_v48, %v2343_v44  ;;  %v783_v41 = vld [vmem:[#allocation2 + $0x88] sm:$0xff]  ;;  %v773_v43 = vld [vmem:[#allocation2 + $0x38] sm:$0xff] }
 0x24f   : > { %1210 = vst.msk [vmem:[#allocation2 + $0x50] sm:$0xff] %vm1199_vm2, %v1177_v49  ;;  %v1178_v53 = vadd.f32 %v2375_v50, %v777_v45  ;;  %1200 = vst.msk [vmem:[#allocation2] sm:$0xff] %vm1199_vm2, %v1167_v51  ;;  %v1168_v54 = vadd.f32 %v2345_v52, %v767_v47 }
 0x251   : > { %1211 = vst.msk [vmem:[#allocation2 + $0x58] sm:$0xff] %vm1199_vm2, %v1178_v53  ;;  %v2376_v55 = vpop.f32.mrb[4].mxu1  ;;  %1201 = vst.msk [vmem:[#allocation2 + $0x8] sm:$0xff] %vm1199_vm2, %v1168_v54  ;;  %v2346_v56 = vpop.f32.mrb[36].mxu0  ;;  %v784_v53 = vld [vmem:[#allocation2 + $0x90] sm:$0xff] }
 0x252   : > { %v2377_v58 = vpop.f32.mrb[5].mxu1  ;;  %v2347_v60 = vpop.f32.mrb[37].mxu0 }
 0x253   : > { %v2378_v61 = vadd.f32 %v2377_v58, %v2376_v55  ;;  %v2379_v62 = vpop.f32.mrb[6].mxu1  ;;  %v2348_v63 = vadd.f32 %v2347_v60, %v2346_v56  ;;  %v2349_v0 = vpop.f32.mrb[38].mxu0  ;;  %v774_v55 = vld [vmem:[#allocation2 + $0x40] sm:$0xff] }
 0x254   : > { %v2380_v2 = vpop.f32.mrb[7].mxu1  ;;  %v2350_v4 = vpop.f32.mrb[39].mxu0 }
 0x255   : > { %v1179_v5 = vadd.f32 %v2378_v61, %v778_v57  ;;  %v2381_v6 = vadd.f32 %v2380_v2, %v2379_v62  ;;  %v1169_v7 = vadd.f32 %v2348_v63, %v768_v59  ;;  %v2351_v8 = vadd.f32 %v2350_v4, %v2349_v0  ;;  %v785_v61 = vld [vmem:[#allocation2 + $0x98] sm:$0xff]  ;;  %v775_v63 = vld [vmem:[#allocation2 + $0x48] sm:$0xff] }
 0x257   : > { %1212 = vst.msk [vmem:[#allocation2 + $0x60] sm:$0xff] %vm1199_vm2, %v1179_v5  ;;  %v1180_v9 = vadd.f32 %v2381_v6, %v779_v1  ;;  %1202 = vst.msk [vmem:[#allocation2 + $0x10] sm:$0xff] %vm1199_vm2, %v1169_v7  ;;  %v1170_v10 = vadd.f32 %v2351_v8, %v769_v3  ;;  %v786_v8 = vld [vmem:[#allocation2 + $0xa0] sm:$0xff] }
 0x259   : > { %1213 = vst.msk [vmem:[#allocation2 + $0x68] sm:$0xff] %vm1199_vm2, %v1180_v9  ;;  %v2382_v11 = vpop.f32.mrb[8].mxu1  ;;  %1203 = vst.msk [vmem:[#allocation2 + $0x18] sm:$0xff] %vm1199_vm2, %v1170_v10  ;;  %v2352_v12 = vpop.f32.mrb[40].mxu0 }
 0x25a   : > { %v2383_v14 = vpop.f32.mrb[9].mxu1  ;;  %v2353_v16 = vpop.f32.mrb[41].mxu0 }
 0x25b   : > { %v2384_v17 = vadd.f32 %v2383_v14, %v2382_v11  ;;  %v2385_v18 = vpop.f32.mrb[10].mxu1  ;;  %v2354_v19 = vadd.f32 %v2353_v16, %v2352_v12  ;;  %v2355_v20 = vpop.f32.mrb[42].mxu0  ;;  %v787_v12 = vld [vmem:[#allocation2 + $0xa8] sm:$0xff] }
 0x25c   : > { %v2386_v22 = vpop.f32.mrb[11].mxu1  ;;  %v2356_v24 = vpop.f32.mrb[43].mxu0 }
 0x25d   : > { %v1181_v25 = vadd.f32 %v2384_v17, %v780_v13  ;;  %v2387_v26 = vadd.f32 %v2386_v22, %v2385_v18  ;;  %v1171_v27 = vadd.f32 %v2354_v19, %v770_v15  ;;  %v2357_v28 = vadd.f32 %v2356_v24, %v2355_v20  ;;  %v788_v18 = vld [vmem:[#allocation2 + $0xb0] sm:$0xff]  ;;  %v789_v22 = vld [vmem:[#allocation2 + $0xb8] sm:$0xff] }
 0x25f   : > { %1214 = vst.msk [vmem:[#allocation2 + $0x70] sm:$0xff] %vm1199_vm2, %v1181_v25  ;;  %v1182_v29 = vadd.f32 %v2387_v26, %v781_v21  ;;  %1204 = vst.msk [vmem:[#allocation2 + $0x20] sm:$0xff] %vm1199_vm2, %v1171_v27  ;;  %v1172_v30 = vadd.f32 %v2357_v28, %v771_v23  ;;  %v790_v28 = vld [vmem:[#allocation2 + $0xc0] sm:$0xff] }
 0x261   : > { %1215 = vst.msk [vmem:[#allocation2 + $0x78] sm:$0xff] %vm1199_vm2, %v1182_v29  ;;  %v2388_v31 = vpop.f32.mrb[12].mxu1  ;;  %1205 = vst.msk [vmem:[#allocation2 + $0x28] sm:$0xff] %vm1199_vm2, %v1172_v30  ;;  %v2358_v32 = vpop.f32.mrb[44].mxu0 }
 0x262   : > { %v2389_v34 = vpop.f32.mrb[13].mxu1  ;;  %v2359_v36 = vpop.f32.mrb[45].mxu0 }
 0x263   : > { %v2390_v37 = vadd.f32 %v2389_v34, %v2388_v31  ;;  %v2391_v38 = vpop.f32.mrb[14].mxu1  ;;  %v2360_v39 = vadd.f32 %v2359_v36, %v2358_v32  ;;  %v2361_v40 = vpop.f32.mrb[46].mxu0  ;;  %v791_v32 = vld [vmem:[#allocation2 + $0xc8] sm:$0xff] }
 0x264   : > { %v2392_v42 = vpop.f32.mrb[15].mxu1  ;;  %v2362_v44 = vpop.f32.mrb[47].mxu0 }
 0x265   : > { %v1183_v45 = vadd.f32 %v2390_v37, %v782_v33  ;;  %v2393_v46 = vadd.f32 %v2392_v42, %v2391_v38  ;;  %v1173_v47 = vadd.f32 %v2360_v39, %v772_v35  ;;  %v2363_v48 = vadd.f32 %v2362_v44, %v2361_v40  ;;  %v792_v38 = vld [vmem:[#allocation2 + $0xd0] sm:$0xff]  ;;  %v793_v42 = vld [vmem:[#allocation2 + $0xd8] sm:$0xff] }
 0x267   : > { %1216 = vst.msk [vmem:[#allocation2 + $0x80] sm:$0xff] %vm1199_vm2, %v1183_v45  ;;  %v1184_v49 = vadd.f32 %v2393_v46, %v783_v41  ;;  %1206 = vst.msk [vmem:[#allocation2 + $0x30] sm:$0xff] %vm1199_vm2, %v1173_v47  ;;  %v1174_v50 = vadd.f32 %v2363_v48, %v773_v43  ;;  %v794_v48 = vld [vmem:[#allocation2 + $0xe0] sm:$0xff] }
 0x269   : > { %1217 = vst.msk [vmem:[#allocation2 + $0x88] sm:$0xff] %vm1199_vm2, %v1184_v49  ;;  %v2394_v51 = vpop.f32.mrb[16].mxu1  ;;  %1207 = vst.msk [vmem:[#allocation2 + $0x38] sm:$0xff] %vm1199_vm2, %v1174_v50  ;;  %v2364_v52 = vpop.f32.mrb[48].mxu0 }
 0x26a   : > { %v2395_v54 = vpop.f32.mrb[17].mxu1  ;;  %v2365_v56 = vpop.f32.mrb[49].mxu0 }
 0x26b   : > { %v2396_v57 = vadd.f32 %v2395_v54, %v2394_v51  ;;  %v2397_v58 = vpop.f32.mrb[18].mxu1  ;;  %v2366_v59 = vadd.f32 %v2365_v56, %v2364_v52  ;;  %v2367_v60 = vpop.f32.mrb[50].mxu0  ;;  %v795_v52 = vld [vmem:[#allocation2 + $0xe8] sm:$0xff] }
 0x26c   : > { %v2398_v62 = vpop.f32.mrb[19].mxu1  ;;  %v2368_v0 = vpop.f32.mrb[51].mxu0 }
 0x26d   : > { %v1185_v1 = vadd.f32 %v2396_v57, %v784_v53  ;;  %v2399_v2 = vadd.f32 %v2398_v62, %v2397_v58  ;;  %v1175_v3 = vadd.f32 %v2366_v59, %v774_v55  ;;  %v2369_v4 = vadd.f32 %v2368_v0, %v2367_v60  ;;  %v796_v58 = vld [vmem:[#allocation2 + $0xf0] sm:$0xff]  ;;  %v797_v62 = vld [vmem:[#allocation2 + $0xf8] sm:$0xff] }
 0x26f   : > { %1218 = vst.msk [vmem:[#allocation2 + $0x90] sm:$0xff] %vm1199_vm2, %v1185_v1  ;;  %v1186_v5 = vadd.f32 %v2399_v2, %v785_v61  ;;  %1208 = vst.msk [vmem:[#allocation2 + $0x40] sm:$0xff] %vm1199_vm2, %v1175_v3  ;;  %v1176_v6 = vadd.f32 %v2369_v4, %v775_v63  ;;  %v2687_v3 = vld [vmem:[%s3442_s4] sm:$0xff] (!%p2201_p6)   ;;  %v2688_v4 = vld [vmem:[%s3442_s4 + $0x8] sm:$0xff] (!%p2201_p6)  }
 0x270   : > { %2490 = vmatprep.subr.bf16.mxu0 (!%p2201_p6), %v2687_v3  ;;  %2542 = vmatprep.subr.bf16.mxu1 (!%p2201_p6), %v2687_v3 }
 0x271   : > { %1219 = vst.msk [vmem:[#allocation2 + $0x98] sm:$0xff] %vm1199_vm2, %v1186_v5  ;;  %v2400_v7 = vpop.f32.mrb[20].mxu1  ;;  %1209 = vst.msk [vmem:[#allocation2 + $0x48] sm:$0xff] %vm1199_vm2, %v1176_v6  ;;  %v2689_v5 = vld [vmem:[%s2985_s19] sm:$0xff] (!%p2201_p6)   ;;  %2491 = vmatpush3.bf16.msra.mxu0 (!%p2201_p6), %v2687_v3  ;;  %2544 = vmatpush3.bf16.msra.mxu1 (!%p2201_p6), %v2687_v3 }
 0x272   : > { %v2401_v9 = vpop.f32.mrb[21].mxu1  ;;  %v2690_v6 = vld [vmem:[%s2985_s19 + $0x40] sm:$0xff] (!%p2201_p6)   ;;  %2492 = vmatprep.subr.bf16.mxu0 (!%p2201_p6), %v2688_v4  ;;  %2543 = vmatprep.subr.bf16.mxu1 (!%p2201_p6), %v2688_v4 }
 0x273   : > { %v2402_v10 = vadd.f32 %v2401_v9, %v2400_v7  ;;  %v2403_v11 = vpop.f32.mrb[22].mxu1  ;;  %v2691_v7 = vld [vmem:[%s2985_s19 + $0x8] sm:$0xff] (!%p2201_p6)   ;;  %2494 = vmatprep.mubr.msk.bf16.mxu0 (!%p2201_p6), %vm556_vm1, %v2689_v5  ;;  %2510 = vmatprep.mubr.msk.bf16.mxu1 (!%p2201_p6), %vm556_vm1, %v2690_v6  ;;  %v2693_v9 = vld [vmem:[%s2985_s19 + $0x10] sm:$0xff] (!%p2201_p6)  }
 0x274   : > { %v2404_v13 = vpop.f32.mrb[23].mxu1 }
 0x275   : > { %v1187_v14 = vadd.f32 %v2402_v10, %v786_v8  ;;  %v2405_v15 = vadd.f32 %v2404_v13, %v2403_v11  ;;  %v2692_v8 = vld [vmem:[%s2985_s19 + $0x48] sm:$0xff] (!%p2201_p6)   ;;  %2493 = vmatpush3.bf16.msra.mxu0 (!%p2201_p6), %v2688_v4  ;;  %2545 = vmatpush3.bf16.msra.mxu1 (!%p2201_p6), %v2688_v4  ;;  %v2694_v10 = vld [vmem:[%s2985_s19 + $0x50] sm:$0xff] (!%p2201_p6)   ;;  %v2695_v11 = vld [vmem:[%s2985_s19 + $0x18] sm:$0xff] (!%p2201_p6)  }
 0x276   : > { %v2697_v13 = vld [vmem:[%s2985_s19 + $0x20] sm:$0xff] (!%p2201_p6)  }
 0x277   : > { %1220 = vst.msk [vmem:[#allocation2 + $0xa0] sm:$0xff] %vm1199_vm2, %v1187_v14  ;;  %v1188_v16 = vadd.f32 %v2405_v15, %v787_v12  ;;  %v2696_v12 = vld [vmem:[%s2985_s19 + $0x58] sm:$0xff] (!%p2201_p6)   ;;  %v2698_v14 = vld [vmem:[%s2985_s19 + $0x60] sm:$0xff] (!%p2201_p6)   ;;  %v2699_v15 = vld [vmem:[%s2985_s19 + $0x28] sm:$0xff] (!%p2201_p6)  }
 0x278   : > { %2495 = vmatmul.mubr.msk.bf16.vlgmr.msra.gmra.mrb[0].mxu0 (!%p2201_p6), %vm556_vm1, %v2691_v7  ;;  %2511 = vmatmul.mubr.msk.bf16.vlgmr.msra.gmra.mrb[0].mxu1 (!%p2201_p6), %vm556_vm1, %v2692_v8 }
 0x279   : > { %1221 = vst.msk [vmem:[#allocation2 + $0xa8] sm:$0xff] %vm1199_vm2, %v1188_v16  ;;  %v2406_v17 = vpop.f32.mrb[24].mxu1  ;;  %2498 = vmatprep.mubr.msk.bf16.mxu0 (!%p2201_p6), %vm556_vm1, %v2693_v9  ;;  %2514 = vmatprep.mubr.msk.bf16.mxu1 (!%p2201_p6), %vm556_vm1, %v2694_v10  ;;  %v2700_v16 = vld [vmem:[%s2985_s19 + $0x68] sm:$0xff] (!%p2201_p6)  }
 0x27a   : > { %v2407_v19 = vpop.f32.mrb[25].mxu1 }
 0x27b   : > { %v2408_v20 = vadd.f32 %v2407_v19, %v2406_v17  ;;  %v2409_v21 = vpop.f32.mrb[26].mxu1  ;;  %v2701_v17 = vld [vmem:[%s2985_s19 + $0x30] sm:$0xff] (!%p2201_p6)   ;;  %v2703_v19 = vld [vmem:[%s2985_s19 + $0x38] sm:$0xff] (!%p2201_p6)  }
 0x27c   : > { %v2410_v23 = vpop.f32.mrb[27].mxu1 }
 0x27d   : > { %v1189_v24 = vadd.f32 %v2408_v20, %v788_v18  ;;  %v2411_v25 = vadd.f32 %v2410_v23, %v2409_v21  ;;  %v2702_v18 = vld [vmem:[%s2985_s19 + $0x70] sm:$0xff] (!%p2201_p6)   ;;  %v2704_v20 = vld [vmem:[%s2985_s19 + $0x78] sm:$0xff] (!%p2201_p6)   ;;  %v1573_v23 = vld [vmem:[#allocation2] sm:$0xff] (!%p2201_p6) }
 0x27e   : > { %v1575_v21 = vld [vmem:[#allocation2 + $0x10] sm:$0xff] (!%p2201_p6) }
 0x27f   : > { %1222 = vst.msk [vmem:[#allocation2 + $0xb0] sm:$0xff] %vm1199_vm2, %v1189_v24  ;;  %v1190_v26 = vadd.f32 %v2411_v25, %v789_v22  ;;  %v1591_v22 = vld [vmem:[#allocation2 + $0x90] sm:$0xff] (!%p2201_p6)  ;;  %v1589_v24 = vld [vmem:[#allocation2 + $0x80] sm:$0xff] (!%p2201_p6) }
 0x280   : > { %2499 = vmatmul.mubr.msk.bf16.gmra.mrb[4].mxu0 (!%p2201_p6), %vm556_vm1, %v2695_v11  ;;  %2515 = vmatmul.mubr.msk.bf16.gmra.mrb[4].mxu1 (!%p2201_p6), %vm556_vm1, %v2696_v12 }
 0x281   : > { %1223 = vst.msk [vmem:[#allocation2 + $0xb8] sm:$0xff] %vm1199_vm2, %v1190_v26  ;;  %v2412_v27 = vpop.f32.mrb[28].mxu1  ;;  %2502 = vmatprep.mubr.msk.bf16.mxu0 (!%p2201_p6), %vm556_vm1, %v2697_v13  ;;  %2518 = vmatprep.mubr.msk.bf16.mxu1 (!%p2201_p6), %vm556_vm1, %v2698_v14  ;;  %v3169_v26 = vld [vmem:[%s3443_s22] ss:$0 sm:$0xff] (!%p2201_p6) }
 0x282   : > { %v2413_v29 = vpop.f32.mrb[29].mxu1 }
 0x283   : > { %v2414_v30 = vadd.f32 %v2413_v29, %v2412_v27  ;;  %v2415_v31 = vpop.f32.mrb[30].mxu1  ;;  %v1592_v29 = vld [vmem:[#allocation2 + $0x98] sm:$0xff] (!%p2201_p6) }
 0x284   : > { %v2416_v33 = vpop.f32.mrb[31].mxu1 }
 0x285   : > { %v1191_v34 = vadd.f32 %v2414_v30, %v790_v28  ;;  %v2417_v35 = vadd.f32 %v2416_v33, %v2415_v31  ;;  %v1576_v28 = vld [vmem:[#allocation2 + $0x18] sm:$0xff] (!%p2201_p6) }
 0x287   : > { %1224 = vst.msk [vmem:[#allocation2 + $0xc0] sm:$0xff] %vm1199_vm2, %v1191_v34  ;;  %v1192_v36 = vadd.f32 %v2417_v35, %v791_v32  ;;  %v1574_v34 = vld [vmem:[#allocation2 + $0x8] sm:$0xff] (!%p2201_p6) }
 0x288   : > { %2503 = vmatmul.mubr.msk.bf16.gmra.mrb[8].mxu0 (!%p2201_p6), %vm556_vm1, %v2699_v15  ;;  %2519 = vmatmul.mubr.msk.bf16.gmra.mrb[8].mxu1 (!%p2201_p6), %vm556_vm1, %v2700_v16  ;;  %v1590_v35 = vld [vmem:[#allocation2 + $0x88] sm:$0xff] (!%p2201_p6)  ;;  %v1579_v16 = vld [vmem:[#allocation2 + $0x30] sm:$0xff] (!%p2201_p6) }
 0x289   : > { %1225 = vst.msk [vmem:[#allocation2 + $0xc8] sm:$0xff] %vm1199_vm2, %v1192_v36  ;;  %v2418_v37 = vpop.f32.mrb[32].mxu1  ;;  %2506 = vmatprep.mubr.msk.bf16.mxu0 (!%p2201_p6), %vm556_vm1, %v2701_v17  ;;  %2522 = vmatprep.mubr.msk.bf16.mxu1 (!%p2201_p6), %vm556_vm1, %v2702_v18 }
 0x28a   : > { %v2419_v39 = vpop.f32.mrb[33].mxu1 }
 0x28b   : > { %v2420_v40 = vadd.f32 %v2419_v39, %v2418_v37  ;;  %v2421_v41 = vpop.f32.mrb[34].mxu1 }
 0x28c   : > { %v2422_v43 = vpop.f32.mrb[35].mxu1 }
 0x28d   : > { %v1193_v44 = vadd.f32 %v2420_v40, %v792_v38  ;;  %v2423_v45 = vadd.f32 %v2422_v43, %v2421_v41 }
 0x28f   : > { %1226 = vst.msk [vmem:[#allocation2 + $0xd0] sm:$0xff] %vm1199_vm2, %v1193_v44  ;;  %v1194_v46 = vadd.f32 %v2423_v45, %v793_v42 }
 0x290   : > { %2507 = vmatmul.mubr.msk.bf16.gmra.mrb[12].mxu0 (!%p2201_p6), %vm556_vm1, %v2703_v19  ;;  %2523 = vmatmul.mubr.msk.bf16.gmra.mrb[12].mxu1 (!%p2201_p6), %vm556_vm1, %v2704_v20 }
 0x291   : > { %1227 = vst.msk [vmem:[#allocation2 + $0xd8] sm:$0xff] %vm1199_vm2, %v1194_v46  ;;  %v2424_v47 = vpop.f32.mrb[36].mxu1  ;;  %v3176_v46 = vld [vmem:[%s3444_s26] ss:$0 sm:$0xff] (!%p2201_p6) }
 0x292   : > { %v2425_v49 = vpop.f32.mrb[37].mxu1 }
 0x293   : > { %v2426_v50 = vadd.f32 %v2425_v49, %v2424_v47  ;;  %v2427_v51 = vpop.f32.mrb[38].mxu1 }
 0x294   : > { %v2428_v53 = vpop.f32.mrb[39].mxu1 }
 0x295   : > { %v1195_v54 = vadd.f32 %v2426_v50, %v794_v48  ;;  %v2429_v55 = vadd.f32 %v2428_v53, %v2427_v51 }
 0x297   : > { %1228 = vst.msk [vmem:[#allocation2 + $0xe0] sm:$0xff] %vm1199_vm2, %v1195_v54  ;;  %v1196_v56 = vadd.f32 %v2429_v55, %v795_v52 }
 0x299   : > { %1229 = vst.msk [vmem:[#allocation2 + $0xe8] sm:$0xff] %vm1199_vm2, %v1196_v56  ;;  %v2430_v57 = vpop.f32.mrb[40].mxu1  ;;  %v3183_v56 = vld [vmem:[%s3445_s13] ss:$0 sm:$0xff] (!%p2201_p6) }
 0x29a   : > { %v2431_v59 = vpop.f32.mrb[41].mxu1 }
 0x29b   : > { %v2432_v60 = vadd.f32 %v2431_v59, %v2430_v57  ;;  %v2433_v61 = vpop.f32.mrb[42].mxu1  ;;  %1235 = sbr.rel (%p2201_p6) target bundleno = 917 (0x395), region = 64 }
 0x29c   : > { %v2434_v63 = vpop.f32.mrb[43].mxu1 }
 0x29d   : > { %v1197_v0 = vadd.f32 %v2432_v60, %v796_v58  ;;  %v2435_v1 = vadd.f32 %v2434_v63, %v2433_v61 }
 0x29f   : > { %1230 = vst.msk [vmem:[#allocation2 + $0xf0] sm:$0xff] %vm1199_vm2, %v1197_v0  ;;  %v1198_v2 = vadd.f32 %v2435_v1, %v797_v62 }
 0x2a1   : > { %1231 = vst.msk [vmem:[#allocation2 + $0xf8] sm:$0xff] %vm1199_vm2, %v1198_v2 }
 0x34b   : > { %v2496_v25 = vpop.f32.mrb[0].mxu0  ;;  %v2512_v27 = vpop.f32.mrb[0].mxu1 }
 0x34c   : > { %v1607_v30 = vadd.f32 %v2496_v25, %v1575_v21  ;;  %v1623_v31 = vadd.f32 %v2512_v27, %v1591_v22  ;;  %v1446_v32 = vpop.f32.mrb[1].mxu0  ;;  %v1510_v33 = vpop.f32.mrb[1].mxu1  ;;  %v1593_v25 = vld [vmem:[#allocation2 + $0xa0] sm:$0xff] }
 0x34d   : > { %v1605_v36 = vadd.f32 %v1573_v23, %v1446_v32  ;;  %v1621_v37 = vadd.f32 %v1589_v24, %v1510_v33  ;;  %v2497_v38 = vpop.f32.mrb[2].mxu0  ;;  %v2513_v39 = vpop.f32.mrb[2].mxu1  ;;  %v1595_v23 = vld [vmem:[#allocation2 + $0xb0] sm:$0xff]  ;;  %v1577_v24 = vld [vmem:[#allocation2 + $0x20] sm:$0xff] }
 0x34e   : > { %v1646_v40 = vadd.f32 %v3169_v26, %v1607_v30  ;;  %v1662_v41 = vadd.f32 %v3169_v26, %v1623_v31  ;;  %v1608_v42 = vadd.f32 %v2497_v38, %v1576_v28  ;;  %v1624_v43 = vadd.f32 %v2513_v39, %v1592_v29  ;;  %v1449_v44 = vpop.f32.mrb[3].mxu0  ;;  %v1513_v45 = vpop.f32.mrb[3].mxu1  ;;  %v1580_v38 = vld [vmem:[#allocation2 + $0x38] sm:$0xff] }
 0x34f   : > { %v1644_v47 = vadd.f32 %v3169_v26, %v1605_v36  ;;  %v1660_v48 = vadd.f32 %v3169_v26, %v1621_v37  ;;  %v1606_v49 = vadd.f32 %v1574_v34, %v1449_v44  ;;  %v1622_v50 = vadd.f32 %v1590_v35, %v1513_v45 }
 0x350   : > { %vm1678_vm4 = vcmp.gt.f32.partialorder %v1646_v40, 0.0  ;;  %v1710_v51 = vmul.f32 0.01, %v1646_v40  ;;  %vm1694_vm5 = vcmp.gt.f32.partialorder %v1662_v41, 0.0  ;;  %v1726_v52 = vmul.f32 0.01, %v1662_v41 }
 0x351   : > { %vm1676_vm6 = vcmp.gt.f32.partialorder %v1644_v47, 0.0  ;;  %v1708_v53 = vmul.f32 0.01, %v1644_v47  ;;  %vm1692_vm7 = vcmp.gt.f32.partialorder %v1660_v48, 0.0  ;;  %v1724_v54 = vmul.f32 0.01, %v1660_v48 }
 0x352   : > { %v1742_v55 = vsel %vm1678_vm4, %v1646_v40, %v1710_v51  ;;  %v1758_v57 = vsel %vm1694_vm5, %v1662_v41, %v1726_v52  ;;  %v1647_v58 = vadd.f32 %v3169_v26, %v1608_v42  ;;  %v1663_v59 = vadd.f32 %v3169_v26, %v1624_v43 }
 0x353   : > { %v1781_v60 = vmul.f32 %v3176_v46, %v1742_v55  ;;  %v1797_v61 = vmul.f32 %v3176_v46, %v1758_v57  ;;  %v1740_v62 = vsel %vm1676_vm6, %v1644_v47, %v1708_v53  ;;  %v1756_v63 = vsel %vm1692_vm7, %v1660_v48, %v1724_v54  ;;  %v2500_v0 = vpop.f32.mrb[4].mxu0  ;;  %v2516_v1 = vpop.f32.mrb[4].mxu1 }
 0x354   : > { %v1779_v2 = vmul.f32 %v3176_v46, %v1740_v62  ;;  %v1795_v3 = vmul.f32 %v3176_v46, %v1756_v63  ;;  %vm1679_vm8 = vcmp.gt.f32.partialorder %v1647_v58, 0.0  ;;  %v1711_v4 = vmul.f32 0.01, %v1647_v58  ;;  %v1462_v5 = vpop.f32.mrb[5].mxu0  ;;  %v1526_v6 = vpop.f32.mrb[5].mxu1 }
 0x355   : > { %v1820_v7 = vadd.f32 %v3183_v56, %v1781_v60  ;;  %v1836_v8 = vadd.f32 %v3183_v56, %v1797_v61  ;;  %vm1695_vm9 = vcmp.gt.f32.partialorder %v1663_v59, 0.0  ;;  %v1727_v9 = vmul.f32 0.01, %v1663_v59  ;;  %v2501_v10 = vpop.f32.mrb[6].mxu0  ;;  %v3193_v11 = vpop.f32.mrb[6].mxu1 }
 0x356   : > { %v1818_v12 = vadd.f32 %v3183_v56, %v1779_v2  ;;  %v1834_v13 = vadd.f32 %v3183_v56, %v1795_v3  ;;  %v1743_v14 = vsel %vm1679_vm8, %v1647_v58, %v1711_v4  ;;  %v1645_v15 = vadd.f32 %v3169_v26, %v1606_v49  ;;  %v3198_v17 = vpop.f32.mrb[7].mxu0  ;;  %v3200_v18 = vpop.f32.mrb[7].mxu1  ;;  %v1596_v4 = vld [vmem:[#allocation2 + $0xb8] sm:$0xff] }
 0x357   : > { %v2276_v19 = vpack.c.bf16 %v1820_v7, %v1820_v7  ;;  %v2292_v20 = vpack.c.bf16 %v1836_v8, %v1836_v8  ;;  %v1782_v21 = vmul.f32 %v3176_v46, %v1743_v14  ;;  %v1759_v22 = vsel %vm1695_vm9, %v1663_v59, %v1727_v9 }
 0x358   : > { %v2274_v27 = vpack.c.bf16 %v1818_v12, %v1818_v12  ;;  %v2290_v28 = vpack.c.bf16 %v1834_v13, %v1834_v13  ;;  %v1798_v29 = vmul.f32 %v3176_v46, %v1759_v22  ;;  %vm1677_vm10 = vcmp.gt.f32.partialorder %v1645_v15, 0.0 }
 0x359   : > { %1981 = vst.msk [vmem:[%s2990_s9 + $0x8] sm:$0xf] %vm1978_vm3, %v2276_v19  ;;  %1997 = vst.msk [vmem:[%s2990_s9 + $0x48] sm:$0xf] %vm1978_vm3, %v2292_v20  ;;  %v1821_v30 = vadd.f32 %v3183_v56, %v1782_v21  ;;  %v1709_v31 = vmul.f32 0.01, %v1645_v15  ;;  %v1661_v32 = vadd.f32 %v3169_v26, %v1622_v50  ;;  %v1611_v33 = vadd.f32 %v2500_v0, %v1579_v16 }
 0x35a   : > { %1979 = vst.msk [vmem:[%s2990_s9] sm:$0xf] %vm1978_vm3, %v2274_v27  ;;  %1995 = vst.msk [vmem:[%s2990_s9 + $0x40] sm:$0xf] %vm1978_vm3, %v2290_v28  ;;  %v1837_v34 = vadd.f32 %v3183_v56, %v1798_v29  ;;  %v1627_v35 = vadd.f32 %v2516_v1, %v1595_v23  ;;  %v1609_v36 = vadd.f32 %v1577_v24, %v1462_v5  ;;  %v1578_v5 = vld [vmem:[#allocation2 + $0x28] sm:$0xff] }
 0x35b   : > { %v1625_v37 = vadd.f32 %v1593_v25, %v1526_v6  ;;  %v2277_v39 = vpack.c.bf16 %v1821_v30, %v1821_v30  ;;  %v1741_v40 = vsel %vm1677_vm10, %v1645_v15, %v1709_v31  ;;  %vm1693_vm11 = vcmp.gt.f32.partialorder %v1661_v32, 0.0  ;;  %v3215_v42 = vpop.f32.mrb[8].mxu0  ;;  %v3217_v43 = vpop.f32.mrb[8].mxu1  ;;  %v1594_v21 = vld [vmem:[#allocation2 + $0xa8] sm:$0xff] }
 0x35c   : > { %v1725_v41 = vmul.f32 0.01, %v1661_v32  ;;  %v2293_v44 = vpack.c.bf16 %v1837_v34, %v1837_v34  ;;  %v1780_v45 = vmul.f32 %v3176_v46, %v1741_v40  ;;  %v1650_v47 = vadd.f32 %v3169_v26, %v1611_v33  ;;  %v3222_v49 = vpop.f32.mrb[9].mxu0  ;;  %v3224_v50 = vpop.f32.mrb[9].mxu1  ;;  %v1581_v40 = vld [vmem:[#allocation2 + $0x40] sm:$0xff] }
 0x35d   : > { %v1666_v48 = vadd.f32 %v3169_v26, %v1627_v35  ;;  %1982 = vst.msk [vmem:[%s2990_s9 + $0xc] sm:$0xf] %vm1978_vm3, %v2277_v39  ;;  %v1648_v52 = vadd.f32 %v3169_v26, %v1609_v36  ;;  %v1664_v53 = vadd.f32 %v3169_v26, %v1625_v37  ;;  %v1612_v54 = vadd.f32 %v2501_v10, %v1580_v38  ;;  %v3230_v55 = vpop.f32.mrb[10].mxu0  ;;  %v3232_v57 = vpop.f32.mrb[10].mxu1  ;;  %v1583_v38 = vld [vmem:[#allocation2 + $0x50] sm:$0xff] }
 0x35e   : > { %v1757_v51 = vsel %vm1693_vm11, %v1661_v32, %v1725_v41  ;;  %1998 = vst.msk [vmem:[%s2990_s9 + $0x4c] sm:$0xf] %vm1978_vm3, %v2293_v44  ;;  %v1819_v58 = vadd.f32 %v3183_v56, %v1780_v45  ;;  %vm1682_vm12 = vcmp.gt.f32.partialorder %v1650_v47, 0.0  ;;  %v1714_v60 = vmul.f32 0.01, %v1650_v47  ;;  %v3238_v61 = vpop.f32.mrb[11].mxu0 }
 0x35f   : > { %v1796_v59 = vmul.f32 %v3176_v46, %v1757_v51  ;;  %v3240_v62 = vpop.f32.mrb[11].mxu1  ;;  %vm1698_vm13 = vcmp.gt.f32.partialorder %v1666_v48, 0.0  ;;  %v1730_v63 = vmul.f32 0.01, %v1666_v48  ;;  %vm1680_vm14 = vcmp.gt.f32.partialorder %v1648_v52, 0.0  ;;  %v1599_v39 = vld [vmem:[#allocation2 + $0xd0] sm:$0xff] }
 0x360   : > { %v1712_v0 = vmul.f32 0.01, %v1648_v52  ;;  %v2275_v1 = vpack.c.bf16 %v1819_v58, %v1819_v58  ;;  %v1746_v3 = vsel %vm1682_vm12, %v1650_v47, %v1714_v60  ;;  %vm1696_vm15 = vcmp.gt.f32.partialorder %v1664_v53, 0.0  ;;  %v1597_v60 = vld [vmem:[#allocation2 + $0xc0] sm:$0xff] }
 0x361   : > { %v1835_v2 = vadd.f32 %v3183_v56, %v1796_v59  ;;  %v1785_v6 = vmul.f32 %v3176_v46, %v1746_v3  ;;  %v1762_v7 = vsel %vm1698_vm13, %v1666_v48, %v1730_v63  ;;  %v1728_v9 = vmul.f32 0.01, %v1664_v53 }
 0x362   : > { %v1744_v8 = vsel %vm1680_vm14, %v1648_v52, %v1712_v0  ;;  %1980 = vst.msk [vmem:[%s2990_s9 + $0x4] sm:$0xf] %vm1978_vm3, %v2275_v1  ;;  %v1801_v12 = vmul.f32 %v3176_v46, %v1762_v7  ;;  %v1651_v14 = vadd.f32 %v3169_v26, %v1612_v54  ;;  %v1628_v19 = vadd.f32 %v3193_v11, %v1596_v4 }
 0x363   : > { %v2291_v10 = vpack.c.bf16 %v1835_v2, %v1835_v2  ;;  %v1783_v13 = vmul.f32 %v3176_v46, %v1744_v8  ;;  %v1824_v15 = vadd.f32 %v3183_v56, %v1785_v6  ;;  %v1760_v16 = vsel %vm1696_vm15, %v1664_v53, %v1728_v9  ;;  %v3252_v22 = vpop.f32.mrb[12].mxu0  ;;  %v3254_v23 = vpop.f32.mrb[12].mxu1 }
 0x364   : > { %v1610_v20 = vadd.f32 %v1578_v5, %v3198_v17  ;;  %v1840_v24 = vadd.f32 %v3183_v56, %v1801_v12  ;;  %v1799_v27 = vmul.f32 %v3176_v46, %v1760_v16  ;;  %vm1683_vm0 = vcmp.gt.f32.partialorder %v1651_v14, 0.0  ;;  %v3261_v28 = vpop.f32.mrb[13].mxu0  ;;  %v3263_v29 = vpop.f32.mrb[13].mxu1 }
 0x365   : > { %1996 = vst.msk [vmem:[%s2990_s9 + $0x44] sm:$0xf] %vm1978_vm3, %v2291_v10  ;;  %v1822_v25 = vadd.f32 %v3183_v56, %v1783_v13  ;;  %v2280_v11 = vpack.c.bf16 %v1824_v15, %v1824_v15  ;;  %v1715_v17 = vmul.f32 0.01, %v1651_v14  ;;  %v1667_v30 = vadd.f32 %v3169_v26, %v1628_v19  ;;  %v3267_v32 = vpop.f32.mrb[14].mxu0  ;;  %v3269_v33 = vpop.f32.mrb[14].mxu1 }
 0x366   : > { %v1649_v31 = vadd.f32 %v3169_v26, %v1610_v20  ;;  %v2296_v34 = vpack.c.bf16 %v1840_v24, %v1840_v24  ;;  %v1838_v36 = vadd.f32 %v3183_v56, %v1799_v27  ;;  %v1626_v37 = vadd.f32 %v1594_v21, %v3200_v18  ;;  %v3273_v41 = vpop.f32.mrb[15].mxu0  ;;  %v3275_v44 = vpop.f32.mrb[15].mxu1  ;;  %v1600_v15 = vld [vmem:[#allocation2 + $0xd8] sm:$0xff] }
 0x367   : > { %v2278_v35 = vpack.c.bf16 %v1822_v25, %v1822_v25  ;;  %1985 = vst.msk [vmem:[%s2990_s9 + $0x18] sm:$0xf] %vm1978_vm3, %v2280_v11  ;;  %v1747_v45 = vsel %vm1683_vm0, %v1651_v14, %v1715_v17  ;;  %vm1699_vm1 = vcmp.gt.f32.partialorder %v1667_v30, 0.0  ;;  %v1731_v47 = vmul.f32 0.01, %v1667_v30  ;;  %v1584_v14 = vld [vmem:[#allocation2 + $0x58] sm:$0xff] }
 0x368   : > { %vm1681_vm2 = vcmp.gt.f32.partialorder %v1649_v31, 0.0  ;;  %2001 = vst.msk [vmem:[%s2990_s9 + $0x58] sm:$0xf] %vm1978_vm3, %v2296_v34  ;;  %v2294_v18 = vpack.c.bf16 %v1838_v36, %v1838_v36  ;;  %v1786_v48 = vmul.f32 %v3176_v46, %v1747_v45  ;;  %v1713_v51 = vmul.f32 0.01, %v1649_v31  ;;  %v1598_v34 = vld [vmem:[#allocation2 + $0xc8] sm:$0xff] }
 0x369   : > { %1983 = vst.msk [vmem:[%s2990_s9 + $0x10] sm:$0xf] %vm1978_vm3, %v2278_v35  ;;  %v1665_v52 = vadd.f32 %v3169_v26, %v1626_v37  ;;  %v1763_v53 = vsel %vm1699_vm1, %v1667_v30, %v1731_v47  ;;  %v1615_v54 = vadd.f32 %v3215_v42, %v1583_v38  ;;  %v1631_v58 = vadd.f32 %v3217_v43, %v1599_v39 }
 0x36a   : > { %v1613_v59 = vadd.f32 %v1581_v40, %v3222_v49  ;;  %1999 = vst.msk [vmem:[%s2990_s9 + $0x50] sm:$0xf] %vm1978_vm3, %v2294_v18  ;;  %v1825_v63 = vadd.f32 %v3183_v56, %v1786_v48  ;;  %v1802_v0 = vmul.f32 %v3176_v46, %v1763_v53  ;;  %v1745_v1 = vsel %vm1681_vm2, %v1649_v31, %v1713_v51  ;;  %v1582_v31 = vld [vmem:[#allocation2 + $0x48] sm:$0xff]  ;;  %v1587_v48 = vld [vmem:[#allocation2 + $0x70] sm:$0xff] }
 0x36b   : > { %vm1697_vm4 = vcmp.gt.f32.partialorder %v1665_v52, 0.0  ;;  %v1784_v2 = vmul.f32 %v3176_v46, %v1745_v1  ;;  %v1729_v3 = vmul.f32 0.01, %v1665_v52  ;;  %v1654_v4 = vadd.f32 %v3169_v26, %v1615_v54  ;;  %v1603_v54 = vld [vmem:[#allocation2 + $0xf0] sm:$0xff] }
 0x36c   : > { %v1670_v42 = vadd.f32 %v3169_v26, %v1631_v58  ;;  %v2281_v43 = vpack.c.bf16 %v1825_v63, %v1825_v63  ;;  %v1841_v49 = vadd.f32 %v3183_v56, %v1802_v0  ;;  %v1652_v5 = vadd.f32 %v3169_v26, %v1613_v59 }
 0x36d   : > { %v1629_v6 = vadd.f32 %v1597_v60, %v3224_v50  ;;  %v1823_v7 = vadd.f32 %v3183_v56, %v1784_v2  ;;  %v1761_v8 = vsel %vm1697_vm4, %v1665_v52, %v1729_v3  ;;  %vm1686_vm5 = vcmp.gt.f32.partialorder %v1654_v4, 0.0 }
 0x36e   : > { %v1718_v9 = vmul.f32 0.01, %v1654_v4  ;;  %1986 = vst.msk [vmem:[%s2990_s9 + $0x1c] sm:$0xf] %vm1978_vm3, %v2281_v43  ;;  %v2297_v10 = vpack.c.bf16 %v1841_v49, %v1841_v49  ;;  %v1800_v12 = vmul.f32 %v3176_v46, %v1761_v8  ;;  %vm1702_vm6 = vcmp.gt.f32.partialorder %v1670_v42, 0.0 }
 0x36f   : > { %v1734_v13 = vmul.f32 0.01, %v1670_v42  ;;  %v2279_v16 = vpack.c.bf16 %v1823_v7, %v1823_v7  ;;  %vm1684_vm7 = vcmp.gt.f32.partialorder %v1652_v5, 0.0  ;;  %v1716_v50 = vmul.f32 0.01, %v1652_v5 }
 0x370   : > { %v1750_v19 = vsel %vm1686_vm5, %v1654_v4, %v1718_v9  ;;  %2002 = vst.msk [vmem:[%s2990_s9 + $0x5c] sm:$0xf] %vm1978_vm3, %v2297_v10  ;;  %v1839_v20 = vadd.f32 %v3183_v56, %v1800_v12  ;;  %v1668_v25 = vadd.f32 %v3169_v26, %v1629_v6  ;;  %v1616_v17 = vadd.f32 %v3230_v55, %v1584_v14  ;;  %v1601_v12 = vld [vmem:[#allocation2 + $0xe0] sm:$0xff] }
 0x371   : > { %v1789_v21 = vmul.f32 %v3176_v46, %v1750_v19  ;;  %v1766_v24 = vsel %vm1702_vm6, %v1670_v42, %v1734_v13  ;;  %1984 = vst.msk [vmem:[%s2990_s9 + $0x14] sm:$0xf] %vm1978_vm3, %v2279_v16  ;;  %v1748_v11 = vsel %vm1684_vm7, %v1652_v5, %v1716_v50  ;;  %v1632_v30 = vadd.f32 %v3232_v57, %v1600_v15  ;;  %v1585_v42 = vld [vmem:[#allocation2 + $0x60] sm:$0xff]  ;;  %v1588_v16 = vld [vmem:[#allocation2 + $0x78] sm:$0xff] }
 0x372   : > { %v1805_v27 = vmul.f32 %v3176_v46, %v1766_v24  ;;  %v2295_v35 = vpack.c.bf16 %v1839_v20, %v1839_v20  ;;  %v1787_v37 = vmul.f32 %v3176_v46, %v1748_v11  ;;  %vm1700_vm8 = vcmp.gt.f32.partialorder %v1668_v25, 0.0  ;;  %v1604_v19 = vld [vmem:[#allocation2 + $0xf8] sm:$0xff] }
 0x373   : > { %v1828_v36 = vadd.f32 %v3183_v56, %v1789_v21  ;;  %v1732_v39 = vmul.f32 0.01, %v1668_v25  ;;  %v1655_v40 = vadd.f32 %v3169_v26, %v1616_v17  ;;  %v1671_v45 = vadd.f32 %v3169_v26, %v1632_v30 }
 0x374   : > { %v1844_v38 = vadd.f32 %v3183_v56, %v1805_v27  ;;  %2000 = vst.msk [vmem:[%s2990_s9 + $0x54] sm:$0xf] %vm1978_vm3, %v2295_v35  ;;  %v1826_v57 = vadd.f32 %v3183_v56, %v1787_v37  ;;  %v1614_v47 = vadd.f32 %v1582_v31, %v3238_v61  ;;  %v1630_v18 = vadd.f32 %v1598_v34, %v3240_v62  ;;  %v1586_v34 = vld [vmem:[#allocation2 + $0x68] sm:$0xff] }
 0x375   : > { %v2284_v55 = vpack.c.bf16 %v1828_v36, %v1828_v36  ;;  %v1764_v52 = vsel %vm1700_vm8, %v1668_v25, %v1732_v39  ;;  %vm1687_vm9 = vcmp.gt.f32.partialorder %v1655_v40, 0.0  ;;  %v1719_v53 = vmul.f32 0.01, %v1655_v40 }
 0x376   : > { %v2300_v51 = vpack.c.bf16 %v1844_v38, %v1844_v38  ;;  %v2282_v58 = vpack.c.bf16 %v1826_v57, %v1826_v57  ;;  %v1803_v59 = vmul.f32 %v3176_v46, %v1764_v52  ;;  %vm1703_vm10 = vcmp.gt.f32.partialorder %v1671_v45, 0.0 }
 0x377   : > { %1989 = vst.msk [vmem:[%s2990_s9 + $0x28] sm:$0xf] %vm1978_vm3, %v2284_v55  ;;  %v1735_v60 = vmul.f32 0.01, %v1671_v45  ;;  %v1751_v63 = vsel %vm1687_vm9, %v1655_v40, %v1719_v53  ;;  %v1653_v61 = vadd.f32 %v3169_v26, %v1614_v47  ;;  %v1669_v62 = vadd.f32 %v3169_v26, %v1630_v18  ;;  %v1602_v53 = vld [vmem:[#allocation2 + $0xe8] sm:$0xff] }
 0x378   : > { %2005 = vst.msk [vmem:[%s2990_s9 + $0x68] sm:$0xf] %vm1978_vm3, %v2300_v51  ;;  %v1619_v0 = vadd.f32 %v3252_v22, %v1587_v48  ;;  %1987 = vst.msk [vmem:[%s2990_s9 + $0x20] sm:$0xf] %vm1978_vm3, %v2282_v58  ;;  %v1842_v1 = vadd.f32 %v3183_v56, %v1803_v59  ;;  %v1790_v2 = vmul.f32 %v3176_v46, %v1751_v63 }
 0x379   : > { %v1767_v3 = vsel %vm1703_vm10, %v1671_v45, %v1735_v60  ;;  %v1635_v4 = vadd.f32 %v3254_v23, %v1603_v54  ;;  %vm1685_vm11 = vcmp.gt.f32.partialorder %v1653_v61, 0.0  ;;  %v1717_v49 = vmul.f32 0.01, %v1653_v61 }
 0x37a   : > { %v1806_v43 = vmul.f32 %v3176_v46, %v1767_v3  ;;  %vm1701_vm12 = vcmp.gt.f32.partialorder %v1669_v62, 0.0  ;;  %v2298_v5 = vpack.c.bf16 %v1842_v1, %v1842_v1  ;;  %v1829_v6 = vadd.f32 %v3183_v56, %v1790_v2 }
 0x37b   : > { %v1733_v22 = vmul.f32 0.01, %v1669_v62  ;;  %v1658_v7 = vadd.f32 %v3169_v26, %v1619_v0  ;;  %v1749_v9 = vsel %vm1685_vm11, %v1653_v61, %v1717_v49  ;;  %v1674_v10 = vadd.f32 %v3169_v26, %v1635_v4 }
 0x37c   : > { %v1845_v8 = vadd.f32 %v3183_v56, %v1806_v43  ;;  %v1617_v23 = vadd.f32 %v1585_v42, %v3261_v28  ;;  %2003 = vst.msk [vmem:[%s2990_s9 + $0x60] sm:$0xf] %vm1978_vm3, %v2298_v5  ;;  %v2285_v13 = vpack.c.bf16 %v1829_v6, %v1829_v6  ;;  %v1788_v14 = vmul.f32 %v3176_v46, %v1749_v9 }
 0x37d   : > { %v1765_v15 = vsel %vm1701_vm12, %v1669_v62, %v1733_v22  ;;  %vm1690_vm13 = vcmp.gt.f32.partialorder %v1658_v7, 0.0  ;;  %v1722_v21 = vmul.f32 0.01, %v1658_v7  ;;  %vm1706_vm14 = vcmp.gt.f32.partialorder %v1674_v10, 0.0 }
 0x37e   : > { %v2301_v50 = vpack.c.bf16 %v1845_v8, %v1845_v8  ;;  %v1804_v20 = vmul.f32 %v3176_v46, %v1765_v15  ;;  %1990 = vst.msk [vmem:[%s2990_s9 + $0x2c] sm:$0xf] %vm1978_vm3, %v2285_v13  ;;  %v1827_v28 = vadd.f32 %v3183_v56, %v1788_v14  ;;  %v1738_v24 = vmul.f32 0.01, %v1674_v10 }
 0x37f   : > { %v1656_v25 = vadd.f32 %v3169_v26, %v1617_v23  ;;  %v1633_v27 = vadd.f32 %v1601_v12, %v3263_v29  ;;  %v1754_v17 = vsel %vm1690_vm13, %v1658_v7, %v1722_v21  ;;  %v1620_v30 = vadd.f32 %v3267_v32, %v1588_v16 }
 0x380   : > { %2006 = vst.msk [vmem:[%s2990_s9 + $0x6c] sm:$0xf] %vm1978_vm3, %v2301_v50  ;;  %v1843_v11 = vadd.f32 %v3183_v56, %v1804_v20  ;;  %v1636_v31 = vadd.f32 %v3269_v33, %v1604_v19  ;;  %v2283_v35 = vpack.c.bf16 %v1827_v28, %v1827_v28  ;;  %v1793_v36 = vmul.f32 %v3176_v46, %v1754_v17 }
 0x381   : > { %v1770_v37 = vsel %vm1706_vm14, %v1674_v10, %v1738_v24  ;;  %vm1688_vm15 = vcmp.gt.f32.partialorder %v1656_v25, 0.0  ;;  %v1720_v29 = vmul.f32 0.01, %v1656_v25  ;;  %v1672_v40 = vadd.f32 %v3169_v26, %v1633_v27 }
 0x382   : > { %v2299_v38 = vpack.c.bf16 %v1843_v11, %v1843_v11  ;;  %v1809_v39 = vmul.f32 %v3176_v46, %v1770_v37  ;;  %1988 = vst.msk [vmem:[%s2990_s9 + $0x24] sm:$0xf] %vm1978_vm3, %v2283_v35  ;;  %v1832_v45 = vadd.f32 %v3183_v56, %v1793_v36  ;;  %v1659_v32 = vadd.f32 %v3169_v26, %v1620_v30 }
 0x383   : > { %v1675_v33 = vadd.f32 %v3169_v26, %v1636_v31  ;;  %v1618_v55 = vadd.f32 %v1586_v34, %v3273_v41  ;;  %v1752_v47 = vsel %vm1688_vm15, %v1656_v25, %v1720_v29  ;;  %vm1704_vm0 = vcmp.gt.f32.partialorder %v1672_v40, 0.0 }
 0x384   : > { %2004 = vst.msk [vmem:[%s2990_s9 + $0x64] sm:$0xf] %vm1978_vm3, %v2299_v38  ;;  %v1848_v57 = vadd.f32 %v3183_v56, %v1809_v39  ;;  %v1736_v18 = vmul.f32 0.01, %v1672_v40  ;;  %v2288_v48 = vpack.c.bf16 %v1832_v45, %v1832_v45  ;;  %v1791_v51 = vmul.f32 %v3176_v46, %v1752_v47 }
 0x385   : > { %vm1691_vm1 = vcmp.gt.f32.partialorder %v1659_v32, 0.0  ;;  %v1723_v52 = vmul.f32 0.01, %v1659_v32  ;;  %vm1707_vm2 = vcmp.gt.f32.partialorder %v1675_v33, 0.0  ;;  %v1739_v59 = vmul.f32 0.01, %v1675_v33 }
 0x386   : > { %v2304_v54 = vpack.c.bf16 %v1848_v57, %v1848_v57  ;;  %v1768_v58 = vsel %vm1704_vm0, %v1672_v40, %v1736_v18  ;;  %1993 = vst.msk [vmem:[%s2990_s9 + $0x38] sm:$0xf] %vm1978_vm3, %v2288_v48  ;;  %v1830_v41 = vadd.f32 %v3183_v56, %v1791_v51  ;;  %v1657_v61 = vadd.f32 %v3169_v26, %v1618_v55 }
 0x387   : > { %v1807_v60 = vmul.f32 %v3176_v46, %v1768_v58  ;;  %v1755_v63 = vsel %vm1691_vm1, %v1659_v32, %v1723_v52  ;;  %v1771_v0 = vsel %vm1707_vm2, %v1675_v33, %v1739_v59  ;;  %v1634_v1 = vadd.f32 %v1602_v53, %v3275_v44 }
 0x388   : > { %2009 = vst.msk [vmem:[%s2990_s9 + $0x78] sm:$0xf] %vm1978_vm3, %v2304_v54  ;;  %v1794_v62 = vmul.f32 %v3176_v46, %v1755_v63  ;;  %v2286_v2 = vpack.c.bf16 %v1830_v41, %v1830_v41  ;;  %v1810_v4 = vmul.f32 %v3176_v46, %v1771_v0  ;;  %vm1689_vm4 = vcmp.gt.f32.partialorder %v1657_v61, 0.0 }
 0x389   : > { %v1846_v3 = vadd.f32 %v3183_v56, %v1807_v60  ;;  %v1721_v43 = vmul.f32 0.01, %v1657_v61  ;;  %v1673_v49 = vadd.f32 %v3169_v26, %v1634_v1 }
 0x38a   : > { %v1833_v42 = vadd.f32 %v3183_v56, %v1794_v62  ;;  %1991 = vst.msk [vmem:[%s2990_s9 + $0x30] sm:$0xf] %vm1978_vm3, %v2286_v2  ;;  %v1849_v6 = vadd.f32 %v3183_v56, %v1810_v4 }
 0x38b   : > { %v2302_v5 = vpack.c.bf16 %v1846_v3, %v1846_v3  ;;  %v1753_v22 = vsel %vm1689_vm4, %v1657_v61, %v1721_v43  ;;  %vm1705_vm5 = vcmp.gt.f32.partialorder %v1673_v49, 0.0  ;;  %v1737_v7 = vmul.f32 0.01, %v1673_v49 }
 0x38c   : > { %v2289_v44 = vpack.c.bf16 %v1833_v42, %v1833_v42  ;;  %v2305_v8 = vpack.c.bf16 %v1849_v6, %v1849_v6  ;;  %v1792_v9 = vmul.f32 %v3176_v46, %v1753_v22 }
 0x38d   : > { %2007 = vst.msk [vmem:[%s2990_s9 + $0x70] sm:$0xf] %vm1978_vm3, %v2302_v5  ;;  %v1769_v10 = vsel %vm1705_vm5, %v1673_v49, %v1737_v7 }
 0x38e   : > { %1994 = vst.msk [vmem:[%s2990_s9 + $0x3c] sm:$0xf] %vm1978_vm3, %v2289_v44  ;;  %2010 = vst.msk [vmem:[%s2990_s9 + $0x7c] sm:$0xf] %vm1978_vm3, %v2305_v8  ;;  %v1831_v26 = vadd.f32 %v3183_v56, %v1792_v9  ;;  %v1808_v23 = vmul.f32 %v3176_v46, %v1769_v10 }
 0x390   : > { %v2287_v12 = vpack.c.bf16 %v1831_v26, %v1831_v26  ;;  %v1847_v13 = vadd.f32 %v3183_v56, %v1808_v23 }
 0x392   : > { %1992 = vst.msk [vmem:[%s2990_s9 + $0x34] sm:$0xf] %vm1978_vm3, %v2287_v12  ;;  %v2303_v14 = vpack.c.bf16 %v1847_v13, %v1847_v13 }
 0x394   : > { %2008 = vst.msk [vmem:[%s2990_s9 + $0x74] sm:$0xf] %vm1978_vm3, %v2303_v14 }
 0x395 PF: > { %s21_s12 = sadd.s32 1, %s2801_s12   ;;  %s3446_s20 = sld [smem:[#allocation6_spill]] }
 0x396   : > { %p18_p8 = scmp.ge.s32.totalorder %s21_s12, 6   ;;  %s3447_s27 = smov %s2777_s28 }
 0x397   : > { %s3448_s28 = smov %s2781_s29  ;;  %s3449_s29 = smov %s2920_s25 }
 0x398   : > { %s3450_s30 = smov %s2793_s10  ;;  %s3451_s9 = smov %s2797_s11 }
 0x399   : > { %s3453_s11 = smov %s3459_s15  ;;  %20 = sbr.rel (!%p18_p8) target bundleno = 10 (0xa), region = 106 }
 0x39b   : > { %s3452_s10 = smov %s3446_s20 }
 0x3a0   :  { %2033 = vsyncpa [#allocation4], 1 }
 0x3a1   :  { %2035 = vsyncpa [#allocation4 + $0x1], 1 }

</bundles_post_ra>
